<compile_context>
chip_gen: v7x
topology: tpu7x:2x2x1
jax: 0.10.0
libtpu: 0.0.40
codegen_flags: <defaults>
</compile_context>

<pallas_src>
import functools

import numpy as np
import jax
import jax.numpy as jnp
from jax.experimental import pallas as pl
from jax.experimental.pallas import tpu as pltpu

W0 = 30.0


# ------------------------------ kernel ------------------------------------ #
def _siren_kernel(n_hidden, x_ref, wf_ref, bf_ref, wh_ref, bh_ref,
                  wl_ref, bl_ref, out_ref):
    # Feature-major: x is (in_dim, TN); points on the lane axis.
    x = x_ref[...]

    # First layer (w0 already folded into wf/bf).
    h = jnp.sin(jnp.dot(wf_ref[...], x,
                        preferred_element_type=jnp.float32) + bf_ref[...])

    # Hidden layers (w0 folded in).  n_hidden is small & static -> unrolled.
    for l in range(n_hidden):
        # TODO(synk): torch.nn.Dropout(0.1) after each hidden layer is
        # implemented as eval-mode identity (no stochastic masking).
        h = jnp.sin(jnp.dot(wh_ref[l], h,
                            preferred_element_type=jnp.float32) + bh_ref[l])

    # Last layer: plain linear (is_last => no sin, no w0).
    out_ref[...] = (jnp.dot(wl_ref[...], h,
                            preferred_element_type=jnp.float32)
                    + bl_ref[...]).astype(out_ref.dtype)


# ------------------------------ wrapper ------------------------------------ #
def siren_pallas(x, params, w0=W0, tile_n=256):
    """x: (N, in_dim) f32.  params: list of (W, b) in torch nn.Linear layout,
    W = (out_f, in_f), b = (out_f,), one pair per SirenLayer (depth pairs)."""
    N, in_dim = x.shape
    depth = len(params)
    n_hidden = depth - 2
    assert n_hidden >= 1, "need network_depth >= 3"
    hidden = params[0][0].shape[0]
    out_dim = params[-1][0].shape[0]
    assert N % tile_n == 0 and (tile_n % 128 == 0 or tile_n == N)

    # Fold w0 into every non-last layer's weights/biases (done once, host side).
    wf = w0 * params[0][0]                                       # (hidden, in_dim)
    bf = (w0 * params[0][1]).reshape(hidden, 1)                  # (hidden, 1)
    wh = jnp.stack([w0 * W for W, _ in params[1:-1]])            # (L, hidden, hidden)
    bh = jnp.stack([(w0 * b).reshape(hidden, 1)
                    for _, b in params[1:-1]])                   # (L, hidden, 1)
    wl = params[-1][0]                                           # (out_dim, hidden)
    bl = params[-1][1].reshape(out_dim, 1)                       # (out_dim, 1)

    x_t = x.T                                                    # (in_dim, N) feature-major

    def full_spec(arr):
        nd = arr.ndim
        return pl.BlockSpec(arr.shape, lambda i, _nd=nd: (0,) * _nd)

    kernel = functools.partial(_siren_kernel, n_hidden)

    out_fm = pl.pallas_call(
        kernel,
        out_shape=jax.ShapeDtypeStruct((out_dim, N), jnp.float32),
        grid_spec=pltpu.PrefetchScalarGridSpec(
            num_scalar_prefetch=0,
            grid=(N // tile_n,),
            in_specs=[
                pl.BlockSpec((in_dim, tile_n), lambda i: (0, i)),   # x tile
                full_spec(wf), full_spec(bf),                       # first layer
                full_spec(wh), full_spec(bh),                       # stacked hidden
                full_spec(wl), full_spec(bl),                       # last layer
            ],
            out_specs=pl.BlockSpec((out_dim, tile_n), lambda i: (0, i)),
        ),
        compiler_params=pltpu.CompilerParams(
            dimension_semantics=("parallel",)),
    )(x_t, wf, bf, wh, bh, wl, bl)

    return out_fm.T                                              # (N, out_dim)


# --------------------------- parameter setup ------------------------------- #
def make_siren_params(key, depth, hidden, in_dim, out_dim, w0=W0):
    """Mimic SirenLayer init: weight ~ U(-b, b) with SIREN bound, bias ~
    default nn.Linear init.  Returned in torch layout (unfolded)."""
    dims = [in_dim] + [hidden] * (depth - 1) + [out_dim]
    keys = jax.random.split(key, depth)
    params = []
    for i in range(depth):
        in_f, out_f = dims[i], dims[i + 1]
        kw, kb = jax.random.split(keys[i])
        wb = (1.0 / in_f) if i == 0 else (np.sqrt(6.0 / in_f) / w0)
        W = jax.random.uniform(kw, (out_f, in_f), jnp.float32, -wb, wb)
        bb = 1.0 / np.sqrt(in_f)
        b = jax.random.uniform(kb, (out_f,), jnp.float32, -bb, bb)
        params.append((W, b))
    return params


# ---------------------------- pure-JAX reference ---------------------------- #
def siren_ref(x, params, w0=W0):
    h = x
    last = len(params) - 1
    for idx, (W, b) in enumerate(params):
        h = h @ W.T + b
        if idx != last:
            h = jnp.sin(w0 * h)   # Dropout -> identity (eval mode)
    return h


# --------------------------------- main ------------------------------------ #
if __name__ == "__main__":
    cfg = dict(network_depth=3, network_width=32,
               network_input_size=2, multi_contrast=True)
    out_dim = 4 if cfg["multi_contrast"] else 2

    N = 512                              # number of coordinate points
    key = jax.random.PRNGKey(0)
    kx, kw = jax.random.split(key)

    x = jax.random.uniform(kx, (N, cfg["network_input_size"]),
                           jnp.float32, -1.0, 1.0)
    params = make_siren_params(kw, cfg["network_depth"], cfg["network_width"],
                               cfg["network_input_size"], out_dim)

    out = siren_pallas(x, params, tile_n=256)      # grid = 2 -> both v7x TCs busy
    out = jax.block_until_ready(out)

    ref = siren_ref(x, params)
    np.testing.assert_allclose(np.asarray(out), np.asarray(ref),
                               atol=1e-4, rtol=1e-4)

    print("KERNEL_OK")
</pallas_src>

<mosaic_0001>
module attributes {stable_mosaic.version = 11 : i64} {
  func.func @_siren_kernel(%arg0: i32, %arg1: memref<2x256xf32, #tpu.memory_space<vmem>>, %arg2: memref<32x2xf32, #tpu.memory_space<vmem>>, %arg3: memref<32x1xf32, #tpu.memory_space<vmem>>, %arg4: memref<1x32x32xf32, #tpu.memory_space<vmem>>, %arg5: memref<1x32x1xf32, #tpu.memory_space<vmem>>, %arg6: memref<4x32xf32, #tpu.memory_space<vmem>>, %arg7: memref<4x1xf32, #tpu.memory_space<vmem>>, %arg8: memref<4x256xf32, #tpu.memory_space<vmem>>) attributes {dimension_semantics = [#tpu.dimension_semantics<parallel>], iteration_bounds = array<i64: 2>, scalar_prefetch = 0 : i64, scratch_operands = 0 : i64, tpu.core_type = #tpu.core_type<tc>, window_params = [{transform_indices = @transform_0, window_bounds = array<i64: 2, 256>}, {pipeline_mode = #tpu.pipeline_mode<synchronous>, transform_indices = @transform_1, window_bounds = array<i64: 32, 2>}, {pipeline_mode = #tpu.pipeline_mode<synchronous>, transform_indices = @transform_2, window_bounds = array<i64: 32, 1>}, {pipeline_mode = #tpu.pipeline_mode<synchronous>, transform_indices = @transform_3, window_bounds = array<i64: 1, 32, 32>}, {pipeline_mode = #tpu.pipeline_mode<synchronous>, transform_indices = @transform_4, window_bounds = array<i64: 1, 32, 1>}, {pipeline_mode = #tpu.pipeline_mode<synchronous>, transform_indices = @transform_5, window_bounds = array<i64: 4, 32>}, {pipeline_mode = #tpu.pipeline_mode<synchronous>, transform_indices = @transform_6, window_bounds = array<i64: 4, 1>}, {transform_indices = @transform_7, window_bounds = array<i64: 4, 256>}]} {
    %c0 = arith.constant 0 : index
    %c0_0 = arith.constant 0 : index
    %0 = vector.load %arg1[%c0, %c0_0] : memref<2x256xf32, #tpu.memory_space<vmem>>, vector<2x256xf32>
    %c0_1 = arith.constant 0 : index
    %c0_2 = arith.constant 0 : index
    %1 = vector.load %arg2[%c0_1, %c0_2] : memref<32x2xf32, #tpu.memory_space<vmem>>, vector<32x2xf32>
    %cst = arith.constant dense<0.000000e+00> : vector<32x256xf32>
    %2 = tpu.matmul %1, %0, %cst {dimension_numbers = #tpu.dot_dimension_numbers<[1], [0], [0], [1], [0, 0, 1, 1], [], []>} : vector<32x2xf32>, vector<2x256xf32>, vector<32x256xf32> -> vector<32x256xf32>
    %c0_3 = arith.constant 0 : index
    %c0_4 = arith.constant 0 : index
    %3 = vector.load %arg3[%c0_3, %c0_4] : memref<32x1xf32, #tpu.memory_space<vmem>>, vector<32x1xf32>
    %4 = vector.broadcast %3 : vector<32x1xf32> to vector<32x256xf32>
    %5 = arith.addf %2, %4 : vector<32x256xf32>
    %6 = math.sin %5 : vector<32x256xf32>
    %c0_5 = arith.constant 0 : index
    %c0_6 = arith.constant 0 : index
    %c0_7 = arith.constant 0 : index
    %7 = vector.load %arg4[%c0_5, %c0_6, %c0_7] : memref<1x32x32xf32, #tpu.memory_space<vmem>>, vector<1x32x32xf32>
    %8 = vector.shape_cast %7 : vector<1x32x32xf32> to vector<32x32xf32>
    %cst_8 = arith.constant dense<0.000000e+00> : vector<32x256xf32>
    %9 = tpu.matmul %8, %6, %cst_8 {dimension_numbers = #tpu.dot_dimension_numbers<[1], [0], [0], [1], [0, 0, 1, 1], [], []>} : vector<32x32xf32>, vector<32x256xf32>, vector<32x256xf32> -> vector<32x256xf32>
    %c0_9 = arith.constant 0 : index
    %c0_10 = arith.constant 0 : index
    %c0_11 = arith.constant 0 : index
    %10 = vector.load %arg5[%c0_9, %c0_10, %c0_11] : memref<1x32x1xf32, #tpu.memory_space<vmem>>, vector<1x32x1xf32>
    %11 = vector.shape_cast %10 : vector<1x32x1xf32> to vector<32x1xf32>
    %12 = vector.broadcast %11 : vector<32x1xf32> to vector<32x256xf32>
    %13 = arith.addf %9, %12 : vector<32x256xf32>
    %14 = math.sin %13 : vector<32x256xf32>
    %c0_12 = arith.constant 0 : index
    %c0_13 = arith.constant 0 : index
    %15 = vector.load %arg6[%c0_12, %c0_13] : memref<4x32xf32, #tpu.memory_space<vmem>>, vector<4x32xf32>
    %cst_14 = arith.constant dense<0.000000e+00> : vector<4x256xf32>
    %16 = tpu.matmul %15, %14, %cst_14 {dimension_numbers = #tpu.dot_dimension_numbers<[1], [0], [0], [1], [0, 0, 1, 1], [], []>} : vector<4x32xf32>, vector<32x256xf32>, vector<4x256xf32> -> vector<4x256xf32>
    %c0_15 = arith.constant 0 : index
    %c0_16 = arith.constant 0 : index
    %17 = vector.load %arg7[%c0_15, %c0_16] : memref<4x1xf32, #tpu.memory_space<vmem>>, vector<4x1xf32>
    %18 = vector.broadcast %17 : vector<4x1xf32> to vector<4x256xf32>
    %19 = arith.addf %16, %18 : vector<4x256xf32>
    %c0_17 = arith.constant 0 : index
    %c0_18 = arith.constant 0 : index
    %20 = vector.load %arg8[%c0_17, %c0_18] : memref<4x256xf32, #tpu.memory_space<vmem>>, vector<4x256xf32>
    tpu.vector_store %arg8[%c0_17, %c0_18], %19 {strides = array<i32>} : memref<4x256xf32, #tpu.memory_space<vmem>>, vector<4x256xf32>,
    return
  }
  func.func @transform_0(%arg0: i32) -> (i32, i32) {
    %c0_i32 = arith.constant 0 : i32
    %c0_i32_0 = arith.constant 0 : i32
    return %c0_i32, %arg0 : i32, i32
  }
  func.func @transform_1(%arg0: i32) -> (i32, i32) {
    %c0_i32 = arith.constant 0 : i32
    %c0_i32_0 = arith.constant 0 : i32
    %c0_i32_1 = arith.constant 0 : i32
    return %c0_i32, %c0_i32_0 : i32, i32
  }
  func.func @transform_2(%arg0: i32) -> (i32, i32) {
    %c0_i32 = arith.constant 0 : i32
    %c0_i32_0 = arith.constant 0 : i32
    %c0_i32_1 = arith.constant 0 : i32
    return %c0_i32, %c0_i32_0 : i32, i32
  }
  func.func @transform_3(%arg0: i32) -> (i32, i32, i32) {
    %c0_i32 = arith.constant 0 : i32
    %c0_i32_0 = arith.constant 0 : i32
    %c0_i32_1 = arith.constant 0 : i32
    %c0_i32_2 = arith.constant 0 : i32
    return %c0_i32, %c0_i32_0, %c0_i32_1 : i32, i32, i32
  }
  func.func @transform_4(%arg0: i32) -> (i32, i32, i32) {
    %c0_i32 = arith.constant 0 : i32
    %c0_i32_0 = arith.constant 0 : i32
    %c0_i32_1 = arith.constant 0 : i32
    %c0_i32_2 = arith.constant 0 : i32
    return %c0_i32, %c0_i32_0, %c0_i32_1 : i32, i32, i32
  }
  func.func @transform_5(%arg0: i32) -> (i32, i32) {
    %c0_i32 = arith.constant 0 : i32
    %c0_i32_0 = arith.constant 0 : i32
    %c0_i32_1 = arith.constant 0 : i32
    return %c0_i32, %c0_i32_0 : i32, i32
  }
  func.func @transform_6(%arg0: i32) -> (i32, i32) {
    %c0_i32 = arith.constant 0 : i32
    %c0_i32_0 = arith.constant 0 : i32
    %c0_i32_1 = arith.constant 0 : i32
    return %c0_i32, %c0_i32_0 : i32, i32
  }
  func.func @transform_7(%arg0: i32) -> (i32, i32) {
    %c0_i32 = arith.constant 0 : i32
    %c0_i32_0 = arith.constant 0 : i32
    return %c0_i32, %arg0 : i32, i32
  }
}

</mosaic_0001>

<bundles_post_ra>
// kernel: tpu_custom_call.1
= control target key start
LH: loop header
LB: loop body
LE: loop exit
PB: predicated region body
PF: predicated region fallthrough
CT: control target
= control target key end

     0   :  { %12 = vsyncpa [#allocation3], 0  ;;  %s4401_s0 = inlined_call_operand.vmem [shape: f32[2,512], index: 0, kind: input, shape index: {}]   ;;  %s4402_s1 = inlined_call_operand.vmem [shape: f32[32,2], index: 1, kind: input, shape index: {}]   ;;  %s4403_s2 = inlined_call_operand.vmem [shape: f32[32,1], index: 2, kind: input, shape index: {}]   ;;  %s4404_s3 = inlined_call_operand.vmem [shape: f32[1,32,32], index: 3, kind: input, shape index: {}]   ;;  %s4405_s4 = inlined_call_operand.vmem [shape: f32[1,32,1], index: 4, kind: input, shape index: {}]   ;;  %s4406_s5 = inlined_call_operand.vmem [shape: f32[4,32], index: 5, kind: input, shape index: {}]   ;;  %s4407_s6 = inlined_call_operand.vmem [shape: f32[4,1], index: 6, kind: input, shape index: {}]   ;;  %s4408_s7 = inlined_call_operand.hbm [shape: f32[4,512], index: 7, kind: output, shape index: {}]  }
   0x1   :  { %14 = vsyncpa [#allocation3 + $0x1], 0  ;;  %s2774_s24 = smov 0   ;;  %s2776_s25 = smov 0  }
   0x2   :  { %s2778_s26 = smov 0   ;;  %s2780_s27 = smov 0  }
   0x3 LB: > { %s2795_s28 = sadd.s32 4294967295, %s2723_s27   ;;  %s2379_s29 = sadd.s32 4294967294, %s2723_s27   ;;  %s2723_s27 = sphi %s2780_s27, %s4560_s27   ;;  %s2719_s26 = sphi %s2778_s26, %s4559_s26   ;;  %s2715_s25 = sphi %s2776_s25, %s4558_s25   ;;  %s2711_s24 = sphi %s2774_s24, %s4557_s24  }
   0x4   : > { %s2799_s30 = sadd.s32 1, %s2723_s27   ;;  %s179_s8 = sadd.s32 1, %s2719_s26 }
   0x5   : > { %s176_s9 = ssub.s32 %s2723_s27, %s2799_s30  ;;  %p189_p0 = scmp.ne.s32.totalorder %s2719_s26, %s2715_s25 }
   0x6   : > { %p177_p1 = scmp.eq.s32.totalorder %s176_s9, 0  ;;  %p190_p2 = scmp.eq.s32.totalorder %s2795_s28, 1 }
   0x7   : > { %p195_p3 = scmp.ne.s32.totalorder %s2715_s25, %s2711_s24  ;;  %p196_p4 = scmp.eq.s32.totalorder %s2379_s29, 1 }
   0x8   : > { %s2810_s10 = scalar_select %p177_p1, %s2719_s26, %s179_s8  }
   0x9   : > { %p2812_p5 = por %p190_p2, %p189_p0  ;;  %p2816_p6 = por %p196_p4, %p195_p3 }
   0xa   : > { %p2382_p7 = scmp.ge.s32.totalorder %s2723_s27, 1  ;;  %p241_p8 = scmp.lt.s32.totalorder %s2723_s27, 3 }
   0xc   : > { %p242_p9 = pnand %p2382_p7, %p241_p8 }
   0xe   : > { %245 = sbr.rel (%p242_p9) target bundleno = 1130 (0x46a), region = 48 }
  0x15   : > { %s2384_s13 = sshll.u32 %s2795_s28, 1  ;;  %v4409_v0 = vmov 0.0   ;;  %v285_v1 = vld [vmem:[%s4403_s2] sm:$0xff]  ;;  %v2726_v2 = vmov 0   ;;  %v287_v3 = vld [vmem:[%s4403_s2 + $0x10] sm:$0xff]  ;;  %v286_v4 = vld [vmem:[%s4403_s2 + $0x8] sm:$0xff] }
  0x16   : > { %p274_p10 = scmp.lt.s32.totalorder %s2384_s13, 3  ;;  %400 = vmatprep.mubr.f32.mxu0 %v4409_v0  ;;  %1362 = vmatprep.mubr.f32.mxu1 %v4409_v0  ;;  %v288_v5 = vld [vmem:[%s4403_s2 + $0x18] sm:$0xff]  ;;  %vm331_vm0 = vcmask 1041408   ;;  %v1261_v8 = vld [vmem:[%s4405_s4] sm:$0xff]  ;;  %vm318_vm1 = vcmask 15360   ;;  %v1262_v10 = vld [vmem:[%s4405_s4 + $0x8] sm:$0xff] }
  0x17   : > { %2595 = vset.pattern.permute.xlu0 %v2726_v2  ;;  %2596 = vset.pattern.permute.xlu1 %v2726_v2  ;;  %v281_v9 = vld [vmem:[%s4402_s1] sm:$0xff]  ;;  %v1263_v11 = vld [vmem:[%s4405_s4 + $0x10] sm:$0xff]  ;;  %v282_v12 = vld [vmem:[%s4402_s1 + $0x8] sm:$0xff]  ;;  %v4456_v43 = vmov 683565275   ;;  %s270_s9 = sand.u32 1, %s2715_s25  }
  0x18   : > { %s4562_s13 = smov (!%p274_p10, %s2384_s13), 3  ;;  %291 = vperm.xlu0 %2595, %v285_v1   ;;  %301 = vperm.xlu1 %2596, %v287_v3   ;;  %v1264_v13 = vld [vmem:[%s4405_s4 + $0x18] sm:$0xff]  ;;  %v2220_v14 = vld [vmem:[%s4407_s6] sm:$0xf]  ;;  %v283_v15 = vld [vmem:[%s4402_s1 + $0x10] sm:$0xff]  ;;  %s2383_s14 = sshll.u32 %s270_s9, 3 }
  0x19   : > { %s2385_s22 = sshll.u32 %s4562_s13, 1  ;;  %v284_v16 = vld [vmem:[%s4402_s1 + $0x18] sm:$0xff]  ;;  %v4421_v45 = vmov 2475754826   ;;  %v4419_v49 = vmov 2131351028  }
  0x1a   : > { %s277_s8 = scalar_lea.vmem %s4401_s0, %s2385_s22  ;;  %v4425_v52 = vmov 2102212464   ;;  %v4423_v55 = vmov 920167782   ;;  %v4416_v58 = vmov 1326507024  }
  0x1b   : > { %v2386_v6 = vld.sshfl [vmem:[%s277_s8] sm:$0x33 pattern:$0x76325410]  ;;  %s2467_s15 = sshll.u32 %s2795_s28, 7  ;;  %s272_s16 = scalar_lea.vmem [#allocation2], %s2383_s14 }
  0x1c   : > { %296 = vperm.xlu0 %2595, %v286_v4   ;;  %306 = vperm.xlu1 %2596, %v288_v5   ;;  %v317_v7 = vcombine.high %v2386_v6, %v2386_v6  ;;  %s2320_s17 = sshll.u32 %s272_s16, 4  ;;  %s4359_s19 = scalar_lea.hbm %s4408_s7, %s2467_s15  ;;  %s4361_s17 = int_to_ptr.vmem [resolvable:$true] %s2320_s17 }
  0x1d   : > { %s2306_s20 = scalar_lea.sflag [#allocation3], %s270_s9  ;;  %s2661_s21 = scalar_lea.vmem %s4361_s17, 128 }
  0x1e   : > { %2387 = vmatprep.subr.msk.mxu0 %vm331_vm0, %v317_v7  ;;  %p2662_p11 = scmp.ne.s32.totalorder %s4361_s17, %s2661_s21  ;;  %s2733_s28 = smov [#allocation2]  }
  0x1f   : > { %2388 = vmatpush1.msk.msra.mxu0 %vm331_vm0, %v2386_v6  ;;  %s2665_s22 = sshll.u32 %s2733_s28, 4  ;;  %s2666_s22 = int_to_ptr.vmem [resolvable:$false] %s2665_s22 }
  0x20   : > { %1267 = vperm.xlu0 %2595, %v1261_v8   ;;  %2389 = vmatmul.mubr.msk.f32.vlgmr.msra.gmra.mrb[0].mxu0 %vm318_vm1, %v281_v9  ;;  %p2663_p12 = pnand %p2662_p11, %p2812_p5  ;;  %s2667_s23 = scalar_lea.vmem %s2666_s22, 256 }
  0x21   : > { %1272 = vperm.xlu1 %2596, %v1262_v10   ;;  %406 = vmatprep.mubr.f32.mxu0 %v4409_v0  ;;  %p2668_p0 = scmp.lt.s32.totalorder %s4361_s17, %s2666_s22  ;;  %p2669_p1 = scmp.lt.s32.totalorder %s2667_s23, %s2661_s21 }
  0x22   : > { %p2664_p13 = pneg %p2663_p12 }
  0x23   : > { %p2670_p2 = por %p2669_p1, %p2668_p0 }
  0x24   : > { %1277 = vperm.xlu0 %2595, %v1263_v11   ;;  %2390 = vmatmul.mubr.msk.f32.gmra.mrb[2].mxu0 %vm318_vm1, %v282_v12 }
  0x25   : > { %1282 = vperm.xlu1 %2596, %v1264_v13   ;;  %412 = vmatprep.mubr.f32.mxu0 %v4409_v0  ;;  %p2671_p3 = pnand %p2670_p2, %p2664_p13 }
  0x28   : > { %2223 = vperm.xlu0 %2595, %v2220_v14   ;;  %2391 = vmatmul.mubr.msk.f32.gmra.mrb[4].mxu0 %vm318_vm1, %v283_v15 }
  0x29   : > { %418 = vmatprep.mubr.f32.mxu0 %v4409_v0 }
  0x2c   : > { %2392 = vmatmul.mubr.msk.f32.gmra.mrb[6].mxu0 %vm318_vm1, %v284_v16 }
  0x2d   : > { %2293 = vmatprep.mubr.f32.mxu0 %v4409_v0 }
  0x97   : > { %v292_v17 = vpop.permute.xlu0 %291 }
  0x9b   : > { %v2878_v22 = vpop.permute.xlu0 %296 }
  0xf3   : > { %v402_v18 = vpop.f32.mrb[0].mxu0 }
  0xf4   : > { %v2875_v19 = vadd.f32 %v402_v18, %v292_v17  ;;  %v404_v20 = vpop.f32.mrb[1].mxu0 }
  0xf5   : > { %v2889_v33 = vadd.f32 %v404_v20, %v292_v17 }
  0xf6   : > { %4464 = vst [vmem:[#allocation5_spill] sm:$0xff] %v2875_v19  ;;  %v428_v21 = vand.u32 2139095040, %v2875_v19  ;;  %v4413_v32 = vand.u32 2147483647, %v2875_v19 }
  0xf7   : > { %v408_v23 = vpop.f32.mrb[2].mxu0  ;;  %4466 = vst [vmem:[#allocation7_spill] sm:$0xff] %v2889_v33  ;;  %v532_v41 = vand.u32 2139095040, %v2889_v33 }
  0xf8   : > { %v429_v24 = vshrl.u32 %v428_v21, 23  ;;  %v2881_v25 = vadd.f32 %v408_v23, %v2878_v22  ;;  %v410_v26 = vpop.f32.mrb[3].mxu0  ;;  %v432_v39 = vand.u32 8388607, %v4413_v32 }
  0xf9   : > { %v533_v5 = vshrl.u32 %v532_v41, 23  ;;  %v2924_v23 = vadd.f32 %v410_v26, %v2878_v22 }
  0xfa   : > { %4465 = vst [vmem:[#allocation6_spill] sm:$0xff] %v2881_v25  ;;  %v2393_v27 = vadd.s32 4294967169, %v429_v24  ;;  %v636_v28 = vand.u32 2139095040, %v2881_v25  ;;  %v433_v60 = vor.u32 8388608, %v432_v39  ;;  %v4411_v21 = vand.u32 2147483647, %v2881_v25 }
  0xfb   : > { %v2884_v29 = vpop.f32.mrb[4].mxu0  ;;  %v740_v22 = vand.u32 2139095040, %v2924_v23 }
  0xfc   : > { %v435_v30 = vadd.s32 1, %v2393_v27  ;;  %v2886_v31 = vpop.f32.mrb[5].mxu0  ;;  %v637_v35 = vshrl.u32 %v636_v28, 23  ;;  %v473_v11 = vshll.u32 %v433_v60, 8  ;;  %v640_v39 = vand.u32 8388607, %v4411_v21 }
  0xfe   : > { %vm436_vm2 = vcmp.gt.s32.totalorder %v435_v30, 0  ;;  %v2401_v47 = vadd.s32 4294967169, %v637_v35  ;;  %v2397_v35 = vadd.s32 4294967169, %v533_v5 }
  0xff   : > { %v437_v34 = vsel %vm436_vm2, %v435_v30, 0  ;;  %v2891_v36 = vpop.f32.mrb[6].mxu0 }
 0x100   : > { %v439_v37 = vand.u32 31, %v437_v34  ;;  %v2893_v38 = vpop.f32.mrb[7].mxu0  ;;  %v438_v42 = vshrl.u32 %v437_v34, 5  ;;  %v643_v8 = vadd.s32 1, %v2401_v47 }
 0x102   : > { %v440_v40 = vsub.s32 32, %v439_v37  ;;  %v442_v44 = vshll.u32 %v4456_v43, %v439_v37  ;;  %v445_v46 = vshll.u32 %v4421_v45, %v439_v37  ;;  %v448_v51 = vshll.u32 %v4419_v49, %v439_v37 }
 0x103   : > { %v451_v54 = vshll.u32 %v4425_v52, %v439_v37  ;;  %v454_v57 = vshll.u32 %v4423_v55, %v439_v37  ;;  %vm457_vm3 = vcmp.lt.s32.totalorder %v438_v42, 1  ;;  %vm460_vm4 = vcmp.lt.s32.totalorder %v438_v42, 4 }
 0x104   : > { %v443_v48 = vshrl.u32 %v4421_v45, %v440_v40  ;;  %v446_v50 = vshrl.u32 %v4419_v49, %v440_v40  ;;  %v449_v53 = vshrl.u32 %v4425_v52, %v440_v40  ;;  %v452_v56 = vshrl.u32 %v4423_v55, %v440_v40 }
 0x105   : > { %v455_v59 = vshrl.u32 %v4416_v58, %v440_v40  ;;  %vm459_vm5 = vcmp.lt.s32.totalorder %v438_v42, 3  ;;  %vm458_vm6 = vcmp.lt.s32.totalorder %v438_v42, 2  ;;  %v441_v12 = vshrl.u32 %v4456_v43, %v440_v40 }
 0x106   : > { %v444_v61 = vor.u32 %v443_v48, %v442_v44  ;;  %v447_v62 = vor.u32 %v446_v50, %v445_v46  ;;  %v450_v63 = vor.u32 %v449_v53, %v448_v51  ;;  %v453_v1 = vor.u32 %v452_v56, %v451_v54 }
 0x107   : > { %v456_v2 = vor.u32 %v455_v59, %v454_v57  ;;  %vm644_vm7 = vcmp.gt.s32.totalorder %v643_v8, 0  ;;  %v641_v59 = vor.u32 8388608, %v640_v39 }
 0x108   : > { %v465_v3 = vsel %vm457_vm3, %v444_v61, %v447_v62  ;;  %v469_v4 = vsel %vm457_vm3, %v447_v62, %v450_v63  ;;  %v466_v6 = vsel %vm460_vm4, %v453_v1, 920167782  ;;  %v462_v13 = vsel %vm460_vm4, %v450_v63, 2102212464 }
 0x109   : > { %v470_v7 = vsel %vm460_vm4, %v456_v2, 1326507024  ;;  %v467_v9 = vsel %vm459_vm5, %v450_v63, %v466_v6  ;;  %v461_v24 = vsel %vm457_vm3, %v441_v12, %v444_v61  ;;  %v463_v27 = vsel %vm459_vm5, %v447_v62, %v462_v13  ;;  %v302_v62 = vpop.permute.xlu1 %301 }
 0x10a   : > { %v471_v10 = vsel %vm459_vm5, %v453_v1, %v470_v7  ;;  %v468_v14 = vsel %vm458_vm6, %v465_v3, %v467_v9  ;;  %v645_v28 = vsel %vm644_vm7, %v643_v8, 0  ;;  %v464_v37 = vsel %vm458_vm6, %v461_v24, %v463_v27 }
 0x10b   : > { %v472_v15 = vsel %vm458_vm6, %v469_v4, %v471_v10  ;;  %v2918_v18 = vmul.u32.u64.low %v473_v11, %v468_v14  ;;  %v2919_v20 = vmul.u32.u64.high %v473_v11, %v468_v14, %v2918_v18  ;;  %v647_v30 = vand.u32 31, %v645_v28 }
 0x10c   : > { %v2915_v16 = vmul.u32.u64.low %v473_v11, %v472_v15  ;;  %v2916_v17 = vmul.u32.u64.high %v473_v11, %v472_v15, %v2915_v16  ;;  %v2935_v26 = vshrl.u32 %v645_v28, 5  ;;  %v480_v57 = vmul.u32 %v473_v11, %v464_v37 }
 0x10d   : > { %v483_v34 = vadd.s32 1, %v2919_v20  ;;  %v648_v40 = vsub.s32 32, %v647_v30  ;;  %v650_v41 = vshll.u32 %v4456_v43, %v647_v30  ;;  %v653_v44 = vshll.u32 %v4421_v45, %v647_v30 }
 0x10e   : > { %vm482_vm8 = vc.u32 %v2916_v17, %v2918_v18  ;;  %v656_v46 = vshll.u32 %v4419_v49, %v647_v30  ;;  %v659_v50 = vshll.u32 %v4425_v52, %v647_v30  ;;  %v662_v54 = vshll.u32 %v4423_v55, %v647_v30 }
 0x10f   : > { %v484_v47 = vsel %vm482_vm8, %v483_v34, %v2919_v20  ;;  %v651_v48 = vshrl.u32 %v4421_v45, %v648_v40  ;;  %v654_v42 = vshrl.u32 %v4419_v49, %v648_v40  ;;  %v657_v51 = vshrl.u32 %v4425_v52, %v648_v40 }
 0x110   : > { %v660_v53 = vshrl.u32 %v4423_v55, %v648_v40  ;;  %v663_v56 = vshrl.u32 %v4416_v58, %v648_v40  ;;  %vm665_vm9 = vcmp.lt.s32.totalorder %v2935_v26, 1  ;;  %v485_v3 = vadd.s32 %v484_v47, %v480_v57 }
 0x111   : > { %v652_v60 = vor.u32 %v651_v48, %v650_v41  ;;  %v655_v61 = vor.u32 %v654_v42, %v653_v44  ;;  %v658_v63 = vor.u32 %v657_v51, %v656_v46  ;;  %vm668_vm10 = vcmp.lt.s32.totalorder %v2935_v26, 4 }
 0x112   : > { %v661_v1 = vor.u32 %v660_v53, %v659_v50  ;;  %v664_v2 = vor.u32 %v663_v56, %v662_v54  ;;  %v2953_v5 = vadd.f32 %v2884_v29, %v302_v62  ;;  %vm667_vm11 = vcmp.lt.s32.totalorder %v2935_v26, 3 }
 0x113   : > { %v673_v4 = vsel %vm665_vm9, %v652_v60, %v655_v61  ;;  %v677_v7 = vsel %vm665_vm9, %v655_v61, %v658_v63  ;;  %v539_v9 = vadd.s32 1, %v2397_v35  ;;  %vm666_vm12 = vcmp.lt.s32.totalorder %v2935_v26, 2 }
 0x114   : > { %4467 = vst [vmem:[#allocation8_spill] sm:$0xff] %v2953_v5  ;;  %v674_v6 = vsel %vm668_vm10, %v661_v1, 920167782  ;;  %v678_v8 = vsel %vm668_vm10, %v664_v2, 1326507024  ;;  %v681_v13 = vshll.u32 %v641_v59, 8  ;;  %v649_v39 = vshrl.u32 %v4456_v43, %v648_v40 }
 0x115   : > { %v675_v10 = vsel %vm667_vm11, %v658_v63, %v674_v6  ;;  %v679_v29 = vsel %vm667_vm11, %v661_v1, %v678_v8  ;;  %v486_v14 = vadd.s32 536870912, %v485_v3  ;;  %v741_v20 = vshrl.u32 %v740_v22, 23 }
 0x116   : > { %v676_v11 = vsel %vm666_vm12, %v673_v4, %v675_v10  ;;  %v680_v12 = vsel %vm666_vm12, %v677_v7, %v679_v29  ;;  %vm540_vm13 = vcmp.gt.s32.totalorder %v539_v9, 0  ;;  %v844_v28 = vand.u32 2139095040, %v2953_v5 }
 0x117   : > { %v2971_v15 = vmul.u32.u64.low %v681_v13, %v676_v11  ;;  %v2972_v16 = vmul.u32.u64.high %v681_v13, %v676_v11, %v2971_v15  ;;  %v2975_v24 = vmul.u32.u64.low %v681_v13, %v680_v12  ;;  %v2976_v27 = vmul.u32.u64.high %v681_v13, %v680_v12, %v2975_v24 }
 0x118   : > { %v2979_v30 = vshrl.u32 %v486_v14, 30  ;;  %v2981_v34 = vsel %vm540_vm13, %v539_v9, 0  ;;  %v670_v35 = vsel %vm668_vm10, %v658_v63, 2102212464  ;;  %v845_v37 = vshrl.u32 %v844_v28, 23 }
 0x119   : > { %v2405_v41 = vadd.s32 4294967169, %v741_v20  ;;  %v2987_v44 = vadd.f32 %v2886_v31, %v302_v62  ;;  %v2990_v46 = vand.u32 31, %v2981_v34  ;;  %v669_v47 = vsel %vm665_vm9, %v649_v39, %v652_v60  ;;  %v3040_v39 = vpop.permute.xlu1 %306 }
 0x11a   : > { %4468 = vst [vmem:[#allocation9_spill] sm:$0xff] %v2979_v30  ;;  %v2409_v22 = vadd.s32 4294967169, %v845_v37  ;;  %v671_v48 = vsel %vm667_vm11, %v655_v61, %v670_v35  ;;  %v488_v42 = vshll.u32 %v2979_v30, 30  ;;  %v691_v50 = vadd.s32 1, %v2972_v16 }
 0x11b   : > { %4469 = vst [vmem:[#allocation10_spill] sm:$0xff] %v2987_v44  ;;  %vm690_vm14 = vc.u32 %v2976_v27, %v2971_v15  ;;  %v747_v31 = vadd.s32 1, %v2405_v41  ;;  %v948_v40 = vand.u32 2139095040, %v2987_v44  ;;  %v672_v53 = vsel %vm666_vm12, %v669_v47, %v671_v48 }
 0x11c   : > { %v851_v51 = vadd.s32 1, %v2409_v22  ;;  %v3004_v54 = vsub.s32 32, %v2990_v46  ;;  %v3006_v56 = vsub.s32 %v485_v3, %v488_v42  ;;  %v692_v57 = vsel %vm690_vm14, %v691_v50, %v2972_v16 }
 0x11d   : > { %v4415_v59 = vand.u32 2147483647, %v2953_v5  ;;  %v688_v61 = vmul.u32 %v681_v13, %v672_v53  ;;  %vm748_vm0 = vcmp.gt.s32.totalorder %v747_v31, 0  ;;  %v949_v62 = vshrl.u32 %v948_v40, 23 }
 0x11e   : > { %vm852_vm15 = vcmp.gt.s32.totalorder %v851_v51, 0  ;;  %v4412_v1 = vand.u32 2147483647, %v2889_v33  ;;  %v3013_v26 = vshll.u32 %v4425_v52, %v2990_v46  ;;  %v3017_v2 = vshrl.u32 %v4423_v55, %v3004_v54 }
 0x11f   : > { %v853_v60 = vsel %vm852_vm15, %v851_v51, 0  ;;  %v3021_v3 = vshrl.u32 %v4416_v58, %v3004_v54  ;;  %v3023_v4 = vadd.s32 %v692_v57, %v688_v61  ;;  %v491_v6 = vsub.s32 0, %v3006_v56 }
 0x120   : > { %v855_v63 = vand.u32 31, %v853_v60  ;;  %v3026_v7 = vsel %vm748_vm0, %v747_v31, 0  ;;  %v848_v8 = vand.u32 8388607, %v4415_v59  ;;  %v854_v10 = vshrl.u32 %v853_v60, 5 }
 0x121   : > { %v2413_v12 = vadd.s32 4294967169, %v949_v62  ;;  %v694_v24 = vadd.s32 536870912, %v3023_v4  ;;  %v3044_v42 = vmin.u32 %v491_v6, %v3006_v56  ;;  %v4414_v51 = vand.u32 2147483647, %v2987_v44 }
 0x122   : > { %v856_v9 = vsub.s32 32, %v855_v63  ;;  %v858_v29 = vshll.u32 %v4456_v43, %v855_v63  ;;  %v861_v11 = vshll.u32 %v4421_v45, %v855_v63  ;;  %v864_v16 = vshll.u32 %v4419_v49, %v855_v63 }
 0x123   : > { %v867_v28 = vshll.u32 %v4425_v52, %v855_v63  ;;  %v870_v37 = vshll.u32 %v4423_v55, %v855_v63  ;;  %v3049_v31 = vadd.f32 %v2891_v36, %v3040_v39  ;;  %v849_v40 = vor.u32 8388608, %v848_v8 }
 0x124   : > { %v859_v13 = vshrl.u32 %v4421_v45, %v856_v9  ;;  %v862_v14 = vshrl.u32 %v4419_v49, %v856_v9  ;;  %v865_v20 = vshrl.u32 %v4425_v52, %v856_v9  ;;  %v868_v35 = vshrl.u32 %v4423_v55, %v856_v9 }
 0x125   : > { %v871_v48 = vshrl.u32 %v4416_v58, %v856_v9  ;;  %4470 = vst [vmem:[#allocation11_spill] sm:$0xff] %v3049_v31  ;;  %vm873_vm1 = vcmp.lt.s32.totalorder %v854_v10, 1  ;;  %v955_v57 = vadd.s32 1, %v2413_v12  ;;  %v3051_v60 = vshrl.u32 %v694_v24, 30 }
 0x126   : > { %v860_v41 = vor.u32 %v859_v13, %v858_v29  ;;  %v863_v22 = vor.u32 %v862_v14, %v861_v11  ;;  %v866_v47 = vor.u32 %v865_v20, %v864_v16  ;;  %v869_v50 = vor.u32 %v868_v35, %v867_v28 }
 0x127   : > { %v872_v53 = vor.u32 %v871_v48, %v870_v37  ;;  %4471 = vst [vmem:[#allocation12_spill] sm:$0xff] %v3051_v60  ;;  %vm875_vm2 = vcmp.lt.s32.totalorder %v854_v10, 3  ;;  %vm876_vm3 = vcmp.lt.s32.totalorder %v854_v10, 4  ;;  %v857_v11 = vshrl.u32 %v4456_v43, %v856_v9 }
 0x128   : > { %v881_v61 = vsel %vm873_vm1, %v860_v41, %v863_v22  ;;  %v878_v62 = vsel %vm876_vm3, %v866_v47, 2102212464  ;;  %v882_v63 = vsel %vm876_vm3, %v869_v50, 920167782  ;;  %v885_v6 = vsel %vm873_vm1, %v863_v22, %v866_v47 }
 0x129   : > { %v886_v29 = vsel %vm876_vm3, %v872_v53, 1326507024  ;;  %vm874_vm4 = vcmp.lt.s32.totalorder %v854_v10, 2  ;;  %v883_v36 = vsel %vm875_vm2, %v866_v47, %v882_v63  ;;  %v1052_v8 = vand.u32 2139095040, %v3049_v31 }
 0x12a   : > { %v884_v12 = vsel %vm874_vm4, %v881_v61, %v883_v36  ;;  %v887_v13 = vsel %vm875_vm2, %v869_v50, %v886_v29  ;;  %v889_v14 = vshll.u32 %v849_v40, 8  ;;  %vm956_vm5 = vcmp.gt.s32.totalorder %v955_v57, 0 }
 0x12b   : > { %v877_v16 = vsel %vm873_vm1, %v857_v11, %v860_v41  ;;  %v879_v20 = vsel %vm875_vm2, %v863_v22, %v878_v62  ;;  %v888_v24 = vsel %vm874_vm4, %v885_v6, %v887_v13  ;;  %v952_v9 = vand.u32 8388607, %v4414_v51 }
 0x12c   : > { %v3065_v28 = vmul.u32.u64.low %v889_v14, %v888_v24  ;;  %v3066_v35 = vmul.u32.u64.high %v889_v14, %v888_v24, %v3065_v28  ;;  %v3068_v37 = vmul.u32.u64.low %v889_v14, %v884_v12  ;;  %v3069_v47 = vmul.u32.u64.high %v889_v14, %v884_v12, %v3068_v37 }
 0x12d   : > { %v3074_v48 = vshll.u32 %v4423_v55, %v2990_v46  ;;  %v696_v41 = vshll.u32 %v3051_v60, 30  ;;  %v957_v50 = vsel %vm956_vm5, %v955_v57, 0  ;;  %v1053_v22 = vshrl.u32 %v1052_v8, 23 }
 0x12e   : > { %v3078_v40 = vshrl.u32 %v2981_v34, 5  ;;  %v880_v53 = vsel %vm874_vm4, %v877_v16, %v879_v20  ;;  %v959_v61 = vand.u32 31, %v957_v50  ;;  %v3083_v62 = vand.u32 8388607, %v4412_v1 }
 0x12f   : > { %v493_v63 = vclz %v3044_v42  ;;  %v3088_v6 = vor.u32 %v3017_v2, %v3013_v26  ;;  %v560_v57 = vor.u32 %v3021_v3, %v3074_v48  ;;  %v3093_v29 = vand.u32 31, %v3026_v7 }
 0x130   : > { %vm898_vm6 = vc.u32 %v3066_v35, %v3068_v37  ;;  %v899_v34 = vadd.s32 1, %v3069_v47  ;;  %v953_v10 = vor.u32 8388608, %v952_v9  ;;  %v960_v11 = vsub.s32 32, %v959_v61 }
 0x131   : > { %v3099_v36 = vsub.s32 %v3023_v4, %v696_v41  ;;  %v896_v8 = vmul.u32 %v889_v14, %v880_v53  ;;  %v962_v26 = vshll.u32 %v4456_v43, %v959_v61  ;;  %v2417_v2 = vadd.s32 4294967169, %v1053_v22 }
 0x132   : > { %v900_v12 = vsel %vm898_vm6, %v899_v34, %v3069_v47  ;;  %v963_v3 = vshrl.u32 %v4421_v45, %v960_v11  ;;  %v965_v13 = vshll.u32 %v4421_v45, %v959_v61  ;;  %v966_v16 = vshrl.u32 %v4419_v49, %v960_v11 }
 0x133   : > { %4472 = vst [vmem:[#allocation13_spill] sm:$0xff] %v3099_v36  ;;  %v901_v20 = vadd.s32 %v900_v12, %v896_v8  ;;  %v958_v24 = vshrl.u32 %v957_v50, 5  ;;  %v968_v9 = vshll.u32 %v4419_v49, %v959_v61  ;;  %v969_v28 = vshrl.u32 %v4425_v52, %v960_v11 }
 0x134   : > { %v964_v4 = vor.u32 %v963_v3, %v962_v26  ;;  %v967_v48 = vor.u32 %v966_v16, %v965_v13  ;;  %v971_v14 = vshll.u32 %v4425_v52, %v959_v61  ;;  %v972_v41 = vshrl.u32 %v4423_v55, %v960_v11 }
 0x135   : > { %v902_v22 = vadd.s32 536870912, %v901_v20  ;;  %v970_v47 = vor.u32 %v969_v28, %v968_v9  ;;  %v993_v53 = vshll.u32 %v953_v10, 8  ;;  %v4418_v34 = vand.u32 2147483647, %v3049_v31 }
 0x136   : > { %v699_v0 = vsub.s32 0, %v3099_v36  ;;  %v973_v21 = vor.u32 %v972_v41, %v971_v14  ;;  %v974_v50 = vshll.u32 %v4423_v55, %v959_v61  ;;  %v975_v8 = vshrl.u32 %v4416_v58, %v960_v11 }
 0x137   : > { %v3114_v12 = vshrl.u32 %v902_v22, 30  ;;  %vm977_vm7 = vcmp.lt.s32.totalorder %v958_v24, 1  ;;  %vm980_vm8 = vcmp.lt.s32.totalorder %v958_v24, 4  ;;  %v1059_v26 = vadd.s32 1, %v2417_v2 }
 0x138   : > { %v961_v3 = vshrl.u32 %v4456_v43, %v960_v11  ;;  %v976_v13 = vor.u32 %v975_v8, %v974_v50  ;;  %v982_v16 = vsel %vm980_vm8, %v970_v47, 2102212464  ;;  %v985_v9 = vsel %vm977_vm7, %v964_v4, %v967_v48 }
 0x139   : > { %4473 = vst [vmem:[#allocation14_spill] sm:$0xff] %v3114_v12  ;;  %v904_v10 = vshll.u32 %v3114_v12, 30  ;;  %vm978_vm9 = vcmp.lt.s32.totalorder %v958_v24, 2  ;;  %vm979_vm10 = vcmp.lt.s32.totalorder %v958_v24, 3  ;;  %v986_v28 = vsel %vm980_vm8, %v973_v21, 920167782 }
 0x13a   : > { %v981_v14 = vsel %vm977_vm7, %v961_v3, %v964_v4  ;;  %v987_v41 = vsel %vm979_vm10, %v970_v47, %v986_v28  ;;  %v989_v61 = vsel %vm977_vm7, %v967_v48, %v970_v47  ;;  %v990_v1 = vsel %vm980_vm8, %v976_v13, 1326507024 }
 0x13b   : > { %v3118_v32 = vsub.s32 %v901_v20, %v904_v10  ;;  %v983_v22 = vsel %vm979_vm10, %v967_v48, %v982_v16  ;;  %v988_v51 = vsel %vm978_vm9, %v985_v9, %v987_v41  ;;  %v991_v2 = vsel %vm979_vm10, %v973_v21, %v990_v1 }
 0x13c   : > { %v992_v11 = vsel %vm978_vm9, %v989_v61, %v991_v2  ;;  %v3122_v50 = vmul.u32.u64.low %v993_v53, %v988_v51  ;;  %v3123_v8 = vmul.u32.u64.high %v993_v53, %v988_v51, %v3122_v50  ;;  %vm1060_vm11 = vcmp.gt.s32.totalorder %v1059_v26, 0 }
 0x13d   : > { %v2402_v59 = vmin.u32 %v699_v0, %v3099_v36  ;;  %v3127_v58 = vmul.u32.u64.low %v993_v53, %v992_v11  ;;  %v3128_v4 = vmul.u32.u64.high %v993_v53, %v992_v11, %v3127_v58  ;;  %v1061_v47 = vsel %vm1060_vm11, %v1059_v26, 0 }
 0x13e   : > { %vm564_vm12 = vcmp.lt.s32.totalorder %v3078_v40, 4  ;;  %v984_v20 = vsel %vm978_vm9, %v981_v14, %v983_v22  ;;  %v1056_v21 = vand.u32 8388607, %v4418_v34  ;;  %v1063_v1 = vand.u32 31, %v1061_v47 }
 0x13f   : > { %v3137_v51 = vsel %vm564_vm12, %v3088_v6, 920167782  ;;  %v3141_v0 = vsel %vm564_vm12, %v560_v57, 1326507024  ;;  %v907_v58 = vsub.s32 0, %v3118_v32  ;;  %v3147_v24 = vadd.s32 4294967294, %v493_v63 }
 0x140   : > { %v3150_v26 = vsub.s32 32, %v3093_v29  ;;  %v1003_v3 = vadd.s32 1, %v3123_v8  ;;  %v1064_v13 = vsub.s32 32, %v1063_v1  ;;  %v701_v16 = vclz %v2402_v59 }
 0x141   : > { %v1000_v9 = vmul.u32 %v993_v53, %v984_v20  ;;  %vm1002_vm13 = vc.u32 %v3128_v4, %v3122_v50  ;;  %v3157_v57 = vadd.f32 %v2893_v38, %v3040_v39  ;;  %v1057_v42 = vor.u32 8388608, %v1056_v21 }
 0x142   : > { %v1004_v10 = vsel %vm1002_vm13, %v1003_v3, %v3123_v8  ;;  %v1067_v63 = vshrl.u32 %v4421_v45, %v1064_v13  ;;  %v1070_v28 = vshrl.u32 %v4419_v49, %v1064_v13  ;;  %v2410_v14 = vmin.u32 %v907_v58, %v3118_v32 }
 0x143   : > { %4474 = vst [vmem:[#allocation15_spill] sm:$0xff] %v3157_v57  ;;  %v1005_v41 = vadd.s32 %v1004_v10, %v1000_v9  ;;  %v1066_v59 = vshll.u32 %v4456_v43, %v1063_v1  ;;  %v1073_v53 = vshrl.u32 %v4425_v52, %v1064_v13  ;;  %v1069_v61 = vshll.u32 %v4421_v45, %v1063_v1 }
 0x144   : > { %v1072_v22 = vshll.u32 %v4419_v49, %v1063_v1  ;;  %v1075_v38 = vshll.u32 %v4425_v52, %v1063_v1  ;;  %v1076_v39 = vshrl.u32 %v4423_v55, %v1064_v13  ;;  %v1062_v11 = vshrl.u32 %v1061_v47, 5 }
 0x145   : > { %v1006_v2 = vadd.s32 536870912, %v1005_v41  ;;  %v1068_v8 = vor.u32 %v1067_v63, %v1066_v59  ;;  %v4475_v20 = vmov 1326507024   ;;  %v1071_v3 = vor.u32 %v1070_v28, %v1069_v61 }
 0x146   : > { %v1079_v21 = vshrl.u32 %v4475_v20, %v1064_v13  ;;  %v1074_v58 = vor.u32 %v1073_v53, %v1072_v22  ;;  %v1077_v9 = vor.u32 %v1076_v39, %v1075_v38  ;;  %v1078_v10 = vshll.u32 %v4423_v55, %v1063_v1 }
 0x147   : > { %v3173_v34 = vadd.s32 %v2918_v18, %v2916_v17  ;;  %v3176_v48 = vshrl.u32 %v3026_v7, 5  ;;  %v764_v49 = vshrl.u32 %v4423_v55, %v3150_v26  ;;  %v909_v45 = vclz %v2410_v14 }
 0x148   : > { %vm2396_vm14 = vcmp.lt.s32.totalorder %v3147_v24, 0  ;;  %v767_v47 = vshrl.u32 %v4475_v20, %v3150_v26  ;;  %v1080_v63 = vor.u32 %v1079_v21, %v1078_v10  ;;  %v1156_v28 = vand.u32 2139095040, %v3157_v57 }
 0x149   : > { %v2403_v1 = vadd.s32 4294967294, %v701_v16  ;;  %v3184_v59 = vshrl.u32 %v1006_v2, 30  ;;  %vm1081_vm15 = vcmp.lt.s32.totalorder %v1062_v11, 1  ;;  %vm1084_vm0 = vcmp.lt.s32.totalorder %v1062_v11, 4 }
 0x14a   : > { %v1086_v17 = vsel %vm1084_vm0, %v1074_v58, 2102212464  ;;  %v1089_v18 = vsel %vm1081_vm15, %v1068_v8, %v1071_v3  ;;  %v1090_v7 = vsel %vm1084_vm0, %v1077_v9, 920167782  ;;  %v1097_v53 = vshll.u32 %v1057_v42, 8 }
 0x14b   : > { %4476 = vst [vmem:[#allocation16_spill] sm:$0xff] %v3184_v59  ;;  %v2411_v61 = vadd.s32 4294967294, %v909_v45  ;;  %v1065_v14 = vshrl.u32 %v4456_v43, %v1064_v13  ;;  %vm1082_vm1 = vcmp.lt.s32.totalorder %v1062_v11, 2  ;;  %vm1083_vm2 = vcmp.lt.s32.totalorder %v1062_v11, 3 }
 0x14c   : > { %v1091_v22 = vsel %vm1083_vm2, %v1074_v58, %v1090_v7  ;;  %v1093_v38 = vsel %vm1081_vm15, %v1071_v3, %v1074_v58  ;;  %v1094_v39 = vsel %vm1084_vm0, %v1080_v63, 1326507024  ;;  %v1157_v21 = vshrl.u32 %v1156_v28, 23 }
 0x14d   : > { %v1008_v10 = vshll.u32 %v3184_v59, 30  ;;  %v1085_v16 = vsel %vm1081_vm15, %v1065_v14, %v1068_v8  ;;  %v1087_v2 = vsel %vm1083_vm2, %v1071_v3, %v1086_v17  ;;  %v1092_v55 = vsel %vm1082_vm1, %v1089_v18, %v1091_v22 }
 0x14e   : > { %v1095_v52 = vsel %vm1083_vm2, %v1077_v9, %v1094_v39  ;;  %v3189_v12 = vmul.u32.u64.low %v1097_v53, %v1092_v55  ;;  %v3190_v60 = vmul.u32.u64.high %v1097_v53, %v1092_v55, %v3189_v12  ;;  %v2421_v45 = vadd.s32 4294967169, %v1157_v21 }
 0x14f   : > { %v4478_v13 = vmov 2102212464   ;;  %v4479_v7 = vmov 920167782   ;;  %vm772_vm3 = vcmp.lt.s32.totalorder %v3176_v48, 4  ;;  %v1096_v63 = vsel %vm1082_vm1, %v1093_v38, %v1095_v52 }
 0x150   : > { %4477 = vst [vmem:[#allocation17_spill] sm:$0xff] %v3189_v12  ;;  %v763_v42 = vshll.u32 %v4478_v13, %v3093_v29  ;;  %v766_v58 = vshll.u32 %v4479_v7, %v3093_v29  ;;  %v3202_v8 = vsel %vm2396_vm14, 0, %v3147_v24  ;;  %v1163_v9 = vadd.s32 1, %v2421_v45 }
 0x151   : > { %4480 = vst [vmem:[#allocation18_spill] sm:$0xff] %v3202_v8  ;;  %v3204_v3 = vmul.u32.u64.low %v1097_v53, %v1096_v63  ;;  %v3205_v55 = vmul.u32.u64.high %v1097_v53, %v1096_v63, %v3204_v3  ;;  %v3209_v18 = vsub.s32 %v1005_v41, %v1008_v10  ;;  %v1088_v14 = vsel %vm1082_vm1, %v1085_v16, %v1087_v2 }
 0x152   : > { %v3207_v28 = vor.u32 %v764_v49, %v763_v42  ;;  %v768_v17 = vor.u32 %v767_v47, %v766_v58  ;;  %vm2404_vm4 = vcmp.lt.s32.totalorder %v2403_v1, 0  ;;  %vm2412_vm5 = vcmp.lt.s32.totalorder %v2411_v61, 0 }
 0x153   : > { %4481 = vst [vmem:[#allocation19_spill] sm:$0xff] %v3205_v55  ;;  %v1107_v52 = vadd.s32 1, %v3190_v60  ;;  %vm1164_vm6 = vcmp.gt.s32.totalorder %v1163_v9, 0  ;;  %v497_v22 = vsub.s32 32, %v3202_v8  ;;  %v3216_v24 = vadd.s32 %v2971_v15, %v2976_v27 }
 0x154   : > { %v4431_v38 = vand.u32 2147483647, %v3157_v57  ;;  %v1165_v49 = vsel %vm1164_vm6, %v1163_v9, 0  ;;  %v501_v47 = vsub.s32 4294967266, %v3202_v8  ;;  %v1104_v41 = vmul.u32 %v1097_v53, %v1088_v14 }
 0x155   : > { %vm1106_vm7 = vc.u32 %v3205_v55, %v3189_v12  ;;  %v1167_v11 = vand.u32 31, %v1165_v49  ;;  %v3222_v39 = vsel %vm2404_vm4, 0, %v2403_v1  ;;  %v3224_v21 = vsel %vm2412_vm5, 0, %v2411_v61 }
 0x156   : > { %v1011_v10 = vsub.s32 0, %v3209_v18  ;;  %v1108_v16 = vsel %vm1106_vm7, %v1107_v52, %v3190_v60  ;;  %v3231_v15 = vsel %vm772_vm3, %v3207_v28, 920167782  ;;  %v3235_v27 = vsel %vm772_vm3, %v768_v17, 1326507024 }
 0x157   : > { %v1109_v53 = vadd.s32 %v1108_v16, %v1104_v41  ;;  %v1168_v2 = vsub.s32 32, %v1167_v11  ;;  %v3240_v61 = vshrl.u32 %v3173_v34, %v497_v22  ;;  %v1160_v60 = vand.u32 8388607, %v4431_v38 }
 0x158   : > { %v3246_v45 = vshrl.u32 %v4456_v43, %v3004_v54  ;;  %v3248_v42 = vadd.s32 127, %v501_v47  ;;  %v709_v58 = vsub.s32 4294967266, %v3222_v39  ;;  %v3253_v63 = vadd.s32 %v3068_v37, %v3066_v35 }
 0x159   : > { %4482 = vst [vmem:[#allocation20_spill] sm:$0xff] %v3240_v61  ;;  %v917_v3 = vsub.s32 4294967266, %v3224_v21  ;;  %v2414_v34 = vmin.u32 %v1011_v10, %v3209_v18  ;;  %v1110_v9 = vadd.s32 536870912, %v1109_v53  ;;  %v1170_v17 = vshll.u32 %v4456_v43, %v1167_v11 }
 0x15a   : > { %v4483_v14 = vmov 2475754826   ;;  %v4484_v41 = vmov 2131351028   ;;  %v1177_v38 = vshrl.u32 %v4478_v13, %v1168_v2  ;;  %v1161_v1 = vor.u32 8388608, %v1160_v60 }
 0x15b   : > { %v1171_v52 = vshrl.u32 %v4483_v14, %v1168_v2  ;;  %v1173_v22 = vshll.u32 %v4483_v14, %v1167_v11  ;;  %v1174_v47 = vshrl.u32 %v4484_v41, %v1168_v2  ;;  %v1176_v16 = vshll.u32 %v4484_v41, %v1167_v11 }
 0x15c   : > { %v1166_v35 = vshrl.u32 %v1165_v49, 5  ;;  %v546_v59 = vshll.u32 %v4456_v43, %v2990_v46  ;;  %v1179_v33 = vshll.u32 %v4478_v13, %v1167_v11  ;;  %v1180_v31 = vshrl.u32 %v4479_v7, %v1168_v2 }
 0x15d   : > { %v1172_v37 = vor.u32 %v1171_v52, %v1170_v17  ;;  %v1175_v10 = vor.u32 %v1174_v47, %v1173_v22  ;;  %v1178_v57 = vor.u32 %v1177_v38, %v1176_v16  ;;  %v913_v30 = vsub.s32 32, %v3224_v21 }
 0x15e   : > { %v918_v25 = vadd.s32 127, %v917_v3  ;;  %v1182_v19 = vshll.u32 %v4479_v7, %v1167_v11  ;;  %v1183_v12 = vshrl.u32 %v4475_v20, %v1168_v2  ;;  %v1013_v55 = vclz %v2414_v34 }
 0x15f   : > { %v3270_v60 = vshrl.u32 %v1110_v9, 30  ;;  %v1181_v49 = vor.u32 %v1180_v31, %v1179_v33  ;;  %v547_v17 = vshrl.u32 %v4483_v14, %v3004_v54  ;;  %vm1185_vm8 = vcmp.lt.s32.totalorder %v1166_v35, 1 }
 0x160   : > { %v1184_v52 = vor.u32 %v1183_v12, %v1182_v19  ;;  %vm1188_vm9 = vcmp.lt.s32.totalorder %v1166_v35, 4  ;;  %v1201_v38 = vshll.u32 %v1161_v1, 8  ;;  %v1193_v47 = vsel %vm1185_vm8, %v1172_v37, %v1175_v10 }
 0x161   : > { %v1190_v22 = vsel %vm1188_vm9, %v1178_v57, 2102212464  ;;  %v549_v3 = vshll.u32 %v4483_v14, %v2990_v46  ;;  %v550_v11 = vshrl.u32 %v4484_v41, %v3004_v54  ;;  %v1169_v34 = vshrl.u32 %v4456_v43, %v1168_v2 }
 0x162   : > { %vm1187_vm10 = vcmp.lt.s32.totalorder %v1166_v35, 3  ;;  %v1194_v9 = vsel %vm1188_vm9, %v1181_v49, 920167782  ;;  %v1197_v33 = vsel %vm1185_vm8, %v1175_v10, %v1178_v57  ;;  %v1112_v31 = vshll.u32 %v3270_v60, 30 }
 0x163   : > { %vm1186_vm11 = vcmp.lt.s32.totalorder %v1166_v35, 2  ;;  %v1195_v19 = vsel %vm1187_vm10, %v1178_v57, %v1194_v9  ;;  %v1198_v12 = vsel %vm1188_vm9, %v1184_v52, 1326507024  ;;  %v1189_v16 = vsel %vm1185_vm8, %v1169_v34, %v1172_v37 }
 0x164   : > { %v1191_v1 = vsel %vm1187_vm10, %v1175_v10, %v1190_v22  ;;  %v1196_v20 = vsel %vm1186_vm11, %v1193_v47, %v1195_v19  ;;  %v1199_v7 = vsel %vm1187_vm10, %v1181_v49, %v1198_v12  ;;  %v2415_v44 = vadd.s32 4294967294, %v1013_v55 }
 0x165   : > { %v1200_v5 = vsel %vm1186_vm11, %v1197_v33, %v1199_v7  ;;  %v3280_v36 = vmul.u32.u64.low %v1201_v38, %v1196_v20  ;;  %v3281_v61 = vmul.u32.u64.high %v1201_v38, %v1196_v20, %v3280_v36  ;;  %v552_v43 = vshll.u32 %v4484_v41, %v2990_v46 }
 0x166   : > { %v3284_v8 = vmul.u32.u64.low %v1201_v38, %v1200_v5  ;;  %v3285_v2 = vmul.u32.u64.high %v1201_v38, %v1200_v5, %v3284_v8  ;;  %v553_v57 = vshrl.u32 %v4478_v13, %v3004_v54  ;;  %v3291_v35 = vsub.s32 %v1109_v53, %v1112_v31 }
 0x167   : > { %v1192_v37 = vsel %vm1186_vm11, %v1189_v16, %v1191_v1  ;;  %v548_v10 = vor.u32 %v547_v17, %v546_v59  ;;  %v551_v49 = vor.u32 %v550_v11, %v549_v3  ;;  %v503_v7 = vshll.u32 %v3248_v42, 23 }
 0x168   : > { %v705_v20 = vsub.s32 32, %v3222_v39  ;;  %v3295_v55 = vadd.s32 127, %v709_v58  ;;  %v554_v52 = vor.u32 %v553_v57, %v552_v43  ;;  %v914_v5 = vshll.u32 %v3118_v32, %v3224_v21 }
 0x169   : > { %v915_v46 = vshrl.u32 %v3253_v63, %v913_v30  ;;  %v919_v8 = vshll.u32 %v918_v25, 23  ;;  %v1211_v54 = vadd.s32 1, %v3281_v61  ;;  %vm2416_vm13 = vcmp.lt.s32.totalorder %v2415_v44, 0 }
 0x16a   : > { %v1208_v53 = vmul.u32 %v1201_v38, %v1192_v37  ;;  %vm1210_vm14 = vc.u32 %v3285_v2, %v3280_v36  ;;  %vm561_vm15 = vcmp.lt.s32.totalorder %v3078_v40, 1  ;;  %v1115_v59 = vsub.s32 0, %v3291_v35 }
 0x16b   : > { %v1212_v42 = vsel %vm1210_vm14, %v1211_v54, %v3281_v61  ;;  %vm563_vm0 = vcmp.lt.s32.totalorder %v3078_v40, 3  ;;  %v569_v32 = vsel %vm561_vm15, %v548_v10, %v551_v49  ;;  %v566_v25 = vsel %vm564_vm12, %v554_v52, 2102212464 }
 0x16c   : > { %v1213_v43 = vadd.s32 %v1212_v42, %v1208_v53  ;;  %v571_v30 = vsel %vm563_vm0, %v554_v52, %v3137_v51  ;;  %v573_v21 = vsel %vm561_vm15, %v551_v49, %v554_v52  ;;  %v3316_v58 = vor.u32 %v915_v46, %v914_v5 }
 0x16d   : > { %v3318_v63 = vor.u32 4788187, %v919_v8  ;;  %v3320_v61 = vsel %vm2416_vm13, 0, %v2415_v44  ;;  %vm562_vm1 = vcmp.lt.s32.totalorder %v3078_v40, 2  ;;  %v575_v51 = vsel %vm563_vm0, %v3088_v6, %v3141_v0 }
 0x16e   : > { %v1214_v17 = vadd.s32 536870912, %v1213_v43  ;;  %v572_v38 = vsel %vm562_vm1, %v569_v32, %v571_v30  ;;  %v4485_v22 = vor.u32 8388608, %v3083_v62  ;;  %v2418_v3 = vmin.u32 %v1115_v59, %v3291_v35 }
 0x16f   : > { %v565_v44 = vsel %vm561_vm15, %v3246_v45, %v548_v10  ;;  %v567_v11 = vsel %vm563_vm0, %v551_v49, %v566_v25  ;;  %v576_v34 = vsel %vm562_vm1, %v573_v21, %v575_v51  ;;  %v737_v62 = vand.u32 2147483647, %v2924_v23 }
 0x170   : > { %v577_v47 = vshll.u32 %v4485_v22, 8  ;;  %v3339_v9 = vshrl.u32 %v1214_v17, 30  ;;  %v3345_v6 = vor.u32 4788187, %v503_v7  ;;  %v3348_v0 = vshrl.u32 %v3216_v24, %v705_v20 }
 0x171   : > { %v711_v12 = vshll.u32 %v3295_v55, 23  ;;  %v923_v16 = vcvt.s32.f32 %v3316_v58  ;;  %v1001_v1 = vadd.s32 %v3122_v50, %v3128_v4  ;;  %v921_v37 = vand.u32 2147483647, %v3318_v63 }
 0x172   : > { %v3341_v33 = vmul.u32.u64.low %v577_v47, %v576_v34  ;;  %v3342_v31 = vmul.u32.u64.high %v577_v47, %v576_v34, %v3341_v33  ;;  %v3350_v19 = vmul.u32.u64.low %v577_v47, %v572_v38  ;;  %v3351_v45 = vmul.u32.u64.high %v577_v47, %v572_v38, %v3350_v19 }
 0x173   : > { %v1216_v57 = vshll.u32 %v3339_v9, 30  ;;  %v1021_v10 = vsub.s32 4294967266, %v3320_v61  ;;  %v568_v24 = vsel %vm562_vm1, %v565_v44, %v567_v11  ;;  %v755_v49 = vshrl.u32 %v4483_v14, %v3150_v26 }
 0x174   : > { %v1117_v7 = vclz %v2418_v3  ;;  %vm586_vm12 = vc.u32 %v3342_v31, %v3350_v19  ;;  %v744_v50 = vand.u32 8388607, %v737_v62  ;;  %v587_v4 = vadd.s32 1, %v3351_v45 }
 0x175   : > { %v3365_v20 = vsub.s32 %v1213_v43, %v1216_v57  ;;  %v4486_v52 = vmov 683565275   ;;  %v757_v40 = vshll.u32 %v4483_v14, %v3093_v29  ;;  %v758_v46 = vshrl.u32 %v4484_v41, %v3150_v26 }
 0x176   : > { %v754_v5 = vshll.u32 %v4486_v52, %v3093_v29  ;;  %v584_v54 = vmul.u32 %v577_v47, %v568_v24  ;;  %v760_v53 = vshll.u32 %v4484_v41, %v3093_v29  ;;  %v761_v59 = vshrl.u32 %v4478_v13, %v3150_v26 }
 0x177   : > { %v1219_v8 = vsub.s32 0, %v3365_v20  ;;  %v1022_v42 = vadd.s32 127, %v1021_v10  ;;  %v588_v32 = vsel %vm586_vm12, %v587_v4, %v3351_v45  ;;  %v759_v25 = vor.u32 %v758_v46, %v757_v40 }
 0x178   : > { %v756_v43 = vor.u32 %v755_v49, %v754_v5  ;;  %v1017_v30 = vsub.s32 32, %v3320_v61  ;;  %v589_v63 = vadd.s32 %v588_v32, %v584_v54  ;;  %v762_v17 = vor.u32 %v761_v59, %v760_v53  ;;  %v4487_v59 = vld [vmem:[#allocation18_spill] sm:$0xff]  ;;  %v4489_v32 = vld [vmem:[#allocation20_spill] sm:$0xff] }
 0x179   : > { %v2422_v21 = vmin.u32 %v1219_v8, %v3365_v20  ;;  %v1018_v38 = vshll.u32 %v3209_v18, %v3320_v61  ;;  %v2419_v51 = vadd.s32 4294967294, %v1117_v7  ;;  %v745_v22 = vor.u32 8388608, %v744_v50 }
 0x17a   : > { %vm771_vm2 = vcmp.lt.s32.totalorder %v3176_v48, 3  ;;  %v590_v47 = vadd.s32 536870912, %v589_v63  ;;  %vm769_vm4 = vcmp.lt.s32.totalorder %v3176_v48, 1  ;;  %v1023_v44 = vshll.u32 %v1022_v42, 23 }
 0x17b   : > { %v1221_v29 = vclz %v2422_v21  ;;  %v783_v3 = vsel %vm771_vm2, %v3207_v28, %v3235_v27  ;;  %v777_v11 = vsel %vm769_vm4, %v756_v43, %v759_v25  ;;  %v779_v18 = vsel %vm771_vm2, %v762_v17, %v3231_v15  ;;  %v4490_v21 = vld [vmem:[#allocation13_spill] sm:$0xff] }
 0x17c   : > { %v781_v61 = vsel %vm769_vm4, %v759_v25, %v762_v17  ;;  %v1019_v34 = vshrl.u32 %v1001_v1, %v1017_v30  ;;  %v3401_v45 = vshrl.u32 %v590_v47, 30  ;;  %vm770_vm5 = vcmp.lt.s32.totalorder %v3176_v48, 2 }
 0x17d   : > { %v2423_v33 = vadd.s32 4294967294, %v1221_v29  ;;  %vm2420_vm6 = vcmp.lt.s32.totalorder %v2419_v51, 0  ;;  %v774_v28 = vsel %vm772_vm3, %v762_v17, 2102212464  ;;  %v784_v27 = vsel %vm770_vm5, %v781_v61, %v783_v3  ;;  %v4491_v17 = vld [vmem:[#allocation8_spill] sm:$0xff] }
 0x17e   : > { %v785_v57 = vshll.u32 %v745_v22, 8  ;;  %v592_v15 = vshll.u32 %v3401_v45, 30  ;;  %v753_v10 = vshrl.u32 %v4486_v52, %v3150_v26  ;;  %v780_v1 = vsel %vm770_vm5, %v777_v11, %v779_v18  ;;  %v4495_v18 = vld [vmem:[#allocation10_spill] sm:$0xff] }
 0x17f   : > { %vm2424_vm7 = vcmp.lt.s32.totalorder %v2423_v33, 0  ;;  %v1024_v24 = vor.u32 4788187, %v1023_v44  ;;  %v3418_v4 = vsel %vm2420_vm6, 0, %v2419_v51  ;;  %v775_v46 = vsel %vm771_vm2, %v759_v25, %v774_v28 }
 0x180   : > { %v3413_v49 = vsel %vm2424_vm7, 0, %v2423_v33  ;;  %v3415_v7 = vmul.u32.u64.low %v785_v57, %v784_v27  ;;  %v3416_v50 = vmul.u32.u64.high %v785_v57, %v784_v27, %v3415_v7  ;;  %v3420_v5 = vsub.s32 %v589_v63, %v592_v15 }
 0x181   : > { %v773_v40 = vsel %vm769_vm4, %v753_v10, %v756_v43  ;;  %v1020_v26 = vor.u32 %v1019_v34, %v1018_v38  ;;  %v1229_v8 = vsub.s32 4294967266, %v3413_v49  ;;  %v4488_v42 = vshll.u32 %v3006_v56, %v4487_v59 }
 0x182   : > { %v3427_v54 = vmul.u32.u64.low %v785_v57, %v780_v1  ;;  %v3428_v53 = vmul.u32.u64.high %v785_v57, %v780_v1, %v3427_v54  ;;  %v706_v63 = vshll.u32 %v4490_v21, %v3222_v39  ;;  %v924_v43 = vmul.f32 %v923_v16, %v921_v37 }
 0x183   : > { %v500_v30 = vor.u32 %v4489_v32, %v4488_v42  ;;  %v595_v25 = vsub.s32 0, %v3420_v5  ;;  %vm843_vm3 = vcmp.lt.s32.totalorder %v4491_v17, 0  ;;  %v1025_v38 = vand.u32 2147483647, %v1024_v24 }
 0x184   : > { %v1125_v51 = vsub.s32 4294967266, %v3418_v4  ;;  %v776_v22 = vsel %vm770_vm5, %v773_v40, %v775_v46  ;;  %v505_v56 = vand.u32 2147483647, %v3345_v6  ;;  %v708_v29 = vor.u32 %v3348_v0, %v706_v63  ;;  %v4496_v40 = vld [vmem:[#allocation19_spill] sm:$0xff]  ;;  %v4497_v46 = vld [vmem:[#allocation17_spill] sm:$0xff] }
 0x185   : > { %v2398_v47 = vmin.u32 %v595_v25, %v3420_v5  ;;  %vm794_vm8 = vc.u32 %v3416_v50, %v3427_v54  ;;  %v712_v39 = vor.u32 4788187, %v711_v12  ;;  %v4492_v58 = vand.u32 2147483647, %v4491_v17 }
 0x186   : > { %v1027_v48 = vcvt.s32.f32 %v1020_v26  ;;  %v1230_v37 = vadd.s32 127, %v1229_v8  ;;  %v795_v6 = vadd.s32 1, %v3428_v53  ;;  %v507_v3 = vcvt.s32.f32 %v500_v30 }
 0x187   : > { %vm3453_vm9 = vcmp.le.f32.partialorder %v4492_v58, 0.7853982  ;;  %v925_v0 = vxor.u32 2147483648, %v924_v43  ;;  %v597_v44 = vclz %v2398_v47  ;;  %v792_v11 = vmul.u32 %v785_v57, %v776_v22 }
 0x188   : > { %vm947_vm10 = vcmp.lt.s32.totalorder %v4495_v18, 0  ;;  %v1028_v61 = vmul.f32 %v1027_v48, %v1025_v38  ;;  %v1126_v34 = vadd.s32 127, %v1125_v51  ;;  %v1225_v55 = vsub.s32 32, %v3413_v49 }
 0x189   : > { %v796_v12 = vsel %vm794_vm8, %v795_v6, %v3428_v53  ;;  %v508_v33 = vmul.f32 %v507_v3, %v505_v56  ;;  %v1121_v28 = vsub.s32 32, %v3418_v4  ;;  %v2399_v27 = vadd.s32 4294967294, %v597_v44  ;;  %v4498_v53 = vld [vmem:[#allocation5_spill] sm:$0xff]  ;;  %v4499_v6 = vld [vmem:[#allocation6_spill] sm:$0xff] }
 0x18a   : > { %v797_v15 = vadd.s32 %v796_v12, %v792_v11  ;;  %v713_v10 = vand.u32 2147483647, %v712_v39  ;;  %v715_v1 = vcvt.s32.f32 %v708_v29  ;;  %v1209_v24 = vadd.s32 %v3280_v36, %v3285_v2 }
 0x18b   : > { %v1231_v7 = vshll.u32 %v1230_v37, 23  ;;  %v926_v57 = vsel %vm843_vm3, %v925_v0, %v924_v43  ;;  %v1105_v26 = vadd.s32 %v4497_v46, %v4496_v40  ;;  %vm2400_vm11 = vcmp.lt.s32.totalorder %v2399_v27, 0 }
 0x18c   : > { %v798_v8 = vadd.s32 536870912, %v797_v15  ;;  %vm427_vm13 = vcmp.lt.s32.totalorder %v4498_v53, 0  ;;  %v1029_v59 = vxor.u32 2147483648, %v1028_v61  ;;  %v1127_v42 = vshll.u32 %v1126_v34, 23 }
 0x18d   : > { %v1227_v32 = vshrl.u32 %v1209_v24, %v1225_v55  ;;  %v600_v30 = vsel %vm2400_vm11, 0, %v2399_v27  ;;  %v1123_v21 = vshrl.u32 %v1105_v26, %v1121_v28  ;;  %v585_v63 = vadd.s32 %v3350_v19, %v3342_v31 }
 0x18e   : > { %v601_v36 = vsub.s32 32, %v600_v30  ;;  %v605_v2 = vsub.s32 4294967266, %v600_v30  ;;  %v716_v25 = vmul.f32 %v715_v1, %v713_v10  ;;  %v1226_v43 = vshll.u32 %v3365_v20, %v3413_v49 }
 0x18f   : > { %v1232_v38 = vor.u32 4788187, %v1231_v7  ;;  %v3473_v51 = vshrl.u32 %v798_v8, 30  ;;  %v929_v22 = vsel %vm3453_vm9, %v4491_v17, %v926_v57  ;;  %v1122_v56 = vshll.u32 %v3291_v35, %v3418_v4  ;;  %v4503_v7 = vld [vmem:[#allocation9_spill] sm:$0xff] }
 0x190   : > { %v603_v29 = vshrl.u32 %v585_v63, %v601_v36  ;;  %v606_v47 = vadd.s32 127, %v605_v2  ;;  %v1128_v39 = vor.u32 4788187, %v1127_v42  ;;  %v1228_v31 = vor.u32 %v1227_v32, %v1226_v43  ;;  %v4507_v32 = vld [vmem:[#allocation11_spill] sm:$0xff] }
 0x191   : > { %v602_v19 = vshll.u32 %v3420_v5, %v600_v30  ;;  %v800_v58 = vshll.u32 %v3473_v51, 30  ;;  %v509_v48 = vxor.u32 2147483648, %v508_v33  ;;  %v1030_v20 = vsel %vm947_vm10, %v1029_v59, %v1028_v61  ;;  %v4508_v30 = vld [vmem:[#allocation7_spill] sm:$0xff] }
 0x192   : > { %v1124_v49 = vor.u32 %v1123_v21, %v1122_v56  ;;  %v607_v37 = vshll.u32 %v606_v47, 23  ;;  %vm635_vm14 = vcmp.lt.s32.totalorder %v4499_v6, 0  ;;  %v1233_v3 = vand.u32 2147483647, %v1232_v38 }
 0x193   : > { %v604_v0 = vor.u32 %v603_v29, %v602_v19  ;;  %v3485_v44 = vsub.s32 %v797_v15, %v800_v58  ;;  %v717_v35 = vxor.u32 2147483648, %v716_v25  ;;  %2597 = vcosq.f32 %v929_v22 }
 0x194   : > { %v4500_v4 = vand.u32 2147483647, %v4495_v18  ;;  %v608_v11 = vor.u32 4788187, %v607_v37  ;;  %v1129_v34 = vand.u32 2147483647, %v1128_v39  ;;  %v1235_v55 = vcvt.s32.f32 %v1228_v31 }
 0x195   : > { %v803_v12 = vsub.s32 0, %v3485_v44  ;;  %v510_v28 = vsel %vm427_vm13, %v509_v48, %v508_v33  ;;  %2599 = vsinq.f32 %v929_v22  ;;  %v1131_v27 = vcvt.s32.f32 %v1124_v49  ;;  %v4515_v22 = vld [vmem:[#allocation15_spill] sm:$0xff]  ;;  %v4519_v37 = vld [vmem:[#allocation12_spill] sm:$0xff] }
 0x196   : > { %vm3489_vm15 = vcmp.le.f32.partialorder %v4500_v4, 0.7853982  ;;  %v609_v15 = vand.u32 2147483647, %v608_v11  ;;  %v1236_v10 = vmul.f32 %v1235_v55, %v1233_v3  ;;  %v611_v1 = vcvt.s32.f32 %v604_v0 }
 0x197   : > { %v1033_v61 = vsel %vm3489_vm15, %v4495_v18, %v1030_v20  ;;  %v2406_v24 = vmin.u32 %v803_v12, %v3485_v44  ;;  %v511_v57 = vsub.s32 4, %v4503_v7  ;;  %v718_v40 = vsel %vm635_vm14, %v717_v35, %v716_v25 }
 0x198   : > { %2601 = vcosq.f32 %v1033_v61  ;;  %v4504_v46 = vand.u32 2147483647, %v4498_v53  ;;  %v1132_v33 = vmul.f32 %v1131_v27, %v1129_v34  ;;  %v612_v8 = vmul.f32 %v611_v1, %v609_v15 }
 0x199   : > { %v805_v59 = vclz %v2406_v24  ;;  %2603 = vsinq.f32 %v1033_v61  ;;  %vm1051_vm1 = vcmp.lt.s32.totalorder %v4507_v32, 0  ;;  %v4509_v21 = vand.u32 2147483647, %v4508_v30 }
 0x19a   : > { %vm3505_vm0 = vcmp.le.f32.partialorder %v4504_v46, 0.7853982  ;;  %vm531_vm2 = vcmp.lt.s32.totalorder %v4508_v30, 0  ;;  %v1237_v36 = vxor.u32 2147483648, %v1236_v10  ;;  %v512_v25 = vsel %vm427_vm13, %v511_v57, %v4503_v7 }
 0x19b   : > { %v513_v42 = vsel %vm3505_vm0, %v4498_v53, %v510_v28  ;;  %vm3515_vm12 = vcmp.le.f32.partialorder %v4509_v21, 0.7853982  ;;  %v2407_v2 = vadd.s32 4294967294, %v805_v59  ;;  %v4512_v43 = vand.u32 2147483647, %v4499_v6 }
 0x19c   : > { %vm1155_vm5 = vcmp.lt.s32.totalorder %v4515_v22, 0  ;;  %v615_v56 = vsub.s32 4, %v3401_v45  ;;  %2605 = vcosq.f32 %v513_v42  ;;  %v4516_v47 = vand.u32 2147483647, %v4507_v32 }
 0x19d   : > { %vm3525_vm4 = vcmp.le.f32.partialorder %v4512_v43, 0.7853982  ;;  %v1133_v31 = vxor.u32 2147483648, %v1132_v33  ;;  %v613_v19 = vxor.u32 2147483648, %v612_v8  ;;  %vm2408_vm7 = vcmp.lt.s32.totalorder %v2407_v2, 0  ;;  %v3540_v58 = vpop.eup %2597 }
 0x19e   : > { %v721_v29 = vsel %vm3525_vm4, %v4499_v6, %v718_v40  ;;  %vm3536_vm6 = vcmp.le.f32.partialorder %v4516_v47, 0.7853982  ;;  %2607 = vsinq.f32 %v513_v42  ;;  %v793_v48 = vadd.s32 %v3427_v54, %v3416_v50  ;;  %v4523_v40 = vld [vmem:[#allocation16_spill] sm:$0xff] }
 0x19f   : > { %v808_v20 = vsel %vm2408_vm7, 0, %v2407_v2  ;;  %v514_v49 = vsel %vm3505_vm0, 0, %v512_v25  ;;  %v719_v3 = vsub.s32 4, %v4519_v37  ;;  %v1238_v0 = vsel %vm1155_vm5, %v1237_v36, %v1236_v10  ;;  %v3549_v11 = vpop.eup %2599 }
 0x1a0   : > { %v809_v35 = vsub.s32 32, %v808_v20  ;;  %v813_v4 = vsub.s32 4294967266, %v808_v20  ;;  %2609 = vcosq.f32 %v721_v29  ;;  %v4520_v61 = vand.u32 2147483647, %v4515_v22 }
 0x1a1   : > { %v616_v50 = vsel %vm531_vm2, %v615_v56, %v3401_v45  ;;  %v823_v54 = vsub.s32 4, %v3473_v51  ;;  %2611 = vsinq.f32 %v721_v29  ;;  %v614_v55 = vsel %vm531_vm2, %v613_v19, %v612_v8 }
 0x1a2   : > { %vm3553_vm8 = vcmp.le.f32.partialorder %v4520_v61, 0.7853982  ;;  %v810_v12 = vshll.u32 %v3485_v44, %v808_v20  ;;  %v811_v28 = vshrl.u32 %v793_v48, %v809_v35  ;;  %v814_v27 = vadd.s32 127, %v813_v4  ;;  %v3564_v15 = vpop.eup %2601 }
 0x1a3   : > { %v1134_v10 = vsel %vm1051_vm1, %v1133_v31, %v1132_v33  ;;  %v1241_v1 = vsel %vm3553_vm8, %v4515_v22, %v1238_v0  ;;  %v518_v45 = vadd.s32 3, %v514_v49  ;;  %v720_v24 = vsel %vm635_vm14, %v719_v3, %v4519_v37  ;;  %v3577_v26 = vpop.eup %2603 }
 0x1a4   : > { %v618_v7 = vsel %vm3515_vm12, 0, %v616_v50  ;;  %v812_v44 = vor.u32 %v811_v28, %v810_v12  ;;  %v815_v57 = vshll.u32 %v814_v27, 23  ;;  %v1031_v46 = vsub.s32 4, %v4523_v40  ;;  %v4526_v50 = vld [vmem:[#allocation14_spill] sm:$0xff] }
 0x1a5   : > { %v617_v33 = vsel %vm3515_vm12, %v4508_v30, %v614_v55  ;;  %vm3584_vm11 = vcmp.le.f32.partialorder %v737_v62, 0.7853982  ;;  %vm739_vm13 = vcmp.lt.s32.totalorder %v2924_v23, 0  ;;  %v1239_v59 = vsub.s32 4, %v3339_v9 }
 0x1a6   : > { %2613 = vcosq.f32 %v1241_v1  ;;  %v816_v42 = vor.u32 4788187, %v815_v57  ;;  %v824_v21 = vsel %vm739_vm13, %v823_v54, %v3473_v51  ;;  %v722_v63 = vsel %vm3525_vm4, 0, %v720_v24  ;;  %v2606_v36 = vpop.eup %2605 }
 0x1a7   : > { %v1137_v62 = vsel %vm3536_vm6, %v4507_v32, %v1134_v10  ;;  %2615 = vsinq.f32 %v1241_v1  ;;  %v622_v2 = vadd.s32 3, %v618_v7  ;;  %v519_v25 = vand.u32 3, %v518_v45 }
 0x1a8   : > { %v2608_v43 = vpop.eup %2607  ;;  %2617 = vcosq.f32 %v617_v33  ;;  %v817_v56 = vand.u32 2147483647, %v816_v42  ;;  %v819_v29 = vcvt.s32.f32 %v812_v44  ;;  %v1032_v47 = vsel %vm947_vm10, %v1031_v46, %v4523_v40 }
 0x1a9   : > { %2619 = vsinq.f32 %v617_v33  ;;  %v826_v51 = vsel %vm3584_vm11, 0, %v824_v21  ;;  %v726_v38 = vadd.s32 3, %v722_v63  ;;  %v1240_v31 = vsel %vm1155_vm5, %v1239_v59, %v3339_v9 }
 0x1aa   : > { %v2610_v19 = vpop.eup %2609  ;;  %2621 = vcosq.f32 %v1137_v62  ;;  %v820_v48 = vmul.f32 %v819_v29, %v817_v56  ;;  %v1135_v20 = vsub.s32 4, %v3270_v60  ;;  %v522_v37 = vxor.u32 2147483648, %v2608_v43 }
 0x1ab   : > { %v2612_v49 = vpop.eup %2611  ;;  %2623 = vsinq.f32 %v1137_v62  ;;  %v525_v3 = vxor.u32 2147483648, %v2606_v36  ;;  %v1034_v0 = vsel %vm3489_vm15, 0, %v1032_v47  ;;  %v830_v4 = vadd.s32 3, %v826_v51 }
 0x1ac   : > { %v821_v35 = vxor.u32 2147483648, %v820_v48  ;;  %v1242_v61 = vsel %vm3553_vm8, 0, %v1240_v31  ;;  %v927_v54 = vsub.s32 4, %v4526_v50  ;;  %v3612_v9 = vand.u32 3, %v622_v2 }
 0x1ad   : > { %vm524_vm10 = vcmp.eq.s32.totalorder %v519_v25, 2  ;;  %v727_v55 = vand.u32 3, %v726_v38  ;;  %v733_v12 = vxor.u32 2147483648, %v2610_v19  ;;  %v730_v27 = vxor.u32 2147483648, %v2612_v49 }
 0x1ae   : > { %v822_v28 = vsel %vm739_vm13, %v821_v35, %v820_v48  ;;  %v1038_v10 = vadd.s32 3, %v1034_v0  ;;  %v1136_v5 = vsel %vm1051_vm1, %v1135_v20, %v3270_v60  ;;  %vm521_vm14 = vcmp.eq.s32.totalorder %v519_v25, 0 }
 0x1af   : > { %v825_v34 = vsel %vm3584_vm11, %v2924_v23, %v822_v28  ;;  %v526_v1 = vsel %vm524_vm10, %v525_v3, %v2608_v43  ;;  %vm725_vm15 = vweird.f32 %v4499_v6  ;;  %v1246_v45 = vadd.s32 3, %v1242_v61 }
 0x1b0   : > { %v2614_v24 = vpop.eup %2613  ;;  %2625 = vcosq.f32 %v825_v34  ;;  %v3623_v7 = vand.u32 3, %v830_v4  ;;  %v523_v44 = vsel %vm521_vm14, %v2606_v36, %v522_v37  ;;  %v928_v57 = vsel %vm843_vm3, %v927_v54, %v4526_v50 }
 0x1b1   : > { %v2616_v40 = vpop.eup %2615  ;;  %vm625_vm0 = vcmp.eq.s32.totalorder %v3612_v9, 0  ;;  %vm628_vm1 = vcmp.eq.s32.totalorder %v3612_v9, 2  ;;  %2627 = vsinq.f32 %v825_v34  ;;  %vm729_vm12 = vcmp.eq.s32.totalorder %v727_v55, 0 }
 0x1b2   : > { %vm732_vm2 = vcmp.eq.s32.totalorder %v727_v55, 2  ;;  %v1138_v60 = vsel %vm3536_vm6, 0, %v1136_v5  ;;  %v2618_v46 = vpop.eup %2617  ;;  %vm520_vm4 = vcmp.lt.s32.totalorder %v519_v25, 2  ;;  %v731_v33 = vsel %vm729_vm12, %v2610_v19, %v730_v27 }
 0x1b3   : > { %v734_v8 = vsel %vm732_vm2, %v733_v12, %v2612_v49  ;;  %v1039_v59 = vand.u32 3, %v1038_v10  ;;  %v2620_v42 = vpop.eup %2619  ;;  %v3632_v21 = vsel %vm520_vm4, %v523_v44, %v526_v1  ;;  %v1042_v63 = vxor.u32 2147483648, %v3577_v26 }
 0x1b4   : > { %v1247_v36 = vand.u32 3, %v1246_v45  ;;  %v930_v62 = vsel %vm3453_vm9, 0, %v928_v57  ;;  %v2622_v2 = vpop.eup %2621  ;;  %vm624_vm3 = vcmp.lt.s32.totalorder %v3612_v9, 2  ;;  %vm728_vm5 = vcmp.lt.s32.totalorder %v727_v55, 2 }
 0x1b5   : > { %v1250_v39 = vxor.u32 2147483648, %v2616_v40  ;;  %v1253_v43 = vxor.u32 2147483648, %v2614_v24  ;;  %v1142_v56 = vadd.s32 3, %v1138_v60  ;;  %v2624_v25 = vpop.eup %2623  ;;  %vm836_vm7 = vcmp.eq.s32.totalorder %v3623_v7, 2 }
 0x1b6   : > { %v735_v29 = vsel %vm728_vm5, %v731_v33, %v734_v8  ;;  %v1045_v47 = vxor.u32 2147483648, %v3564_v15  ;;  %vm1245_vm8 = vweird.f32 %v4515_v22  ;;  %v626_v51 = vxor.u32 2147483648, %v2620_v42 }
 0x1b7   : > { %v629_v16 = vxor.u32 2147483648, %v2618_v46  ;;  %vm832_vm9 = vcmp.lt.s32.totalorder %v3623_v7, 2  ;;  %vm1040_vm11 = vcmp.lt.s32.totalorder %v1039_v59, 2  ;;  %v934_v38 = vadd.s32 3, %v930_v62 }
 0x1b8   : > { %vm621_vm13 = vweird.f32 %v4508_v30  ;;  %vm829_vm10 = vweird.f32 %v2924_v23  ;;  %vm1037_vm14 = vweird.f32 %v4495_v18  ;;  %vm1041_vm12 = vcmp.eq.s32.totalorder %v1039_v59, 0 }
 0x1b9   : > { %vm1044_vm2 = vcmp.eq.s32.totalorder %v1039_v59, 2  ;;  %vm1249_vm4 = vcmp.eq.s32.totalorder %v1247_v36, 0  ;;  %vm1252_vm5 = vcmp.eq.s32.totalorder %v1247_v36, 2  ;;  %v736_v31 = vsel %vm725_vm15, nan, %v735_v29  ;;  %v1260_v59 = vld [vmem:[%s4404_s3 + $0x18] sm:$0xff] }
 0x1ba   : > { %v1251_v19 = vsel %vm1249_vm4, %v2614_v24, %v1250_v39  ;;  %v1254_v48 = vsel %vm1252_vm5, %v1253_v43, %v2616_v40  ;;  %v1143_v20 = vand.u32 3, %v1142_v56  ;;  %v1043_v49 = vsel %vm1041_vm12, %v3564_v15, %v1042_v63  ;;  %v2626_v35 = vpop.eup %2625  ;;  %v1273_v43 = vpop.permute.xlu1 %1272 }
 0x1bb   : > { %v1046_v37 = vsel %vm1044_vm2, %v1045_v47, %v3577_v26  ;;  %v1146_v3 = vxor.u32 2147483648, %v2624_v25  ;;  %v1149_v0 = vxor.u32 2147483648, %v2622_v2  ;;  %v627_v4 = vsel %vm625_vm0, %v2618_v46, %v626_v51  ;;  %v2628_v6 = vpop.eup %2627 }
 0x1bc   : > { %v630_v61 = vsel %vm628_vm1, %v629_v16, %v2620_v42  ;;  %vm1248_vm6 = vcmp.lt.s32.totalorder %v1247_v36, 2  ;;  %v935_v50 = vand.u32 3, %v934_v38  ;;  %v837_v54 = vxor.u32 2147483648, %v2626_v35  ;;  %v1268_v42 = vpop.permute.xlu0 %1267 }
 0x1bd   : > { %v1255_v55 = vsel %vm1248_vm6, %v1251_v19, %v1254_v48  ;;  %v938_v12 = vxor.u32 2147483648, %v3549_v11  ;;  %v941_v15 = vxor.u32 2147483648, %v3540_v58  ;;  %v834_v28 = vxor.u32 2147483648, %v2628_v6 }
 0x1be   : > { %v1047_v26 = vsel %vm1040_vm11, %v1043_v49, %v1046_v37  ;;  %vm1145_vm15 = vcmp.eq.s32.totalorder %v1143_v20, 0  ;;  %vm1148_vm12 = vcmp.eq.s32.totalorder %v1143_v20, 2  ;;  %v631_v27 = vsel %vm624_vm3, %v627_v4, %v630_v61 }
 0x1bf   : > { %v838_v10 = vsel %vm836_vm7, %v837_v54, %v2628_v6  ;;  %v1147_v5 = vsel %vm1145_vm15, %v2622_v2, %v1146_v3  ;;  %v1150_v34 = vsel %vm1148_vm12, %v1149_v0, %v2624_v25  ;;  %vm4527_vm0 = vcmp.eq.s32.totalorder %v3623_v7, 0 }
 0x1c0   : > { %v835_v1 = vsel %vm4527_vm0, %v2626_v35, %v834_v28  ;;  %v1256_v45 = vsel %vm1245_vm8, nan, %v1255_v55  ;;  %vm937_vm1 = vcmp.eq.s32.totalorder %v935_v50, 0  ;;  %vm940_vm6 = vcmp.eq.s32.totalorder %v935_v50, 2 }
 0x1c1   : > { %v839_v24 = vsel %vm832_vm9, %v835_v1, %v838_v10  ;;  %v939_v44 = vsel %vm937_vm1, %v3540_v58, %v938_v12  ;;  %v942_v9 = vsel %vm940_vm6, %v941_v15, %v3549_v11  ;;  %vm1144_vm3 = vcmp.lt.s32.totalorder %v1143_v20, 2 }
 0x1c2   : > { %v632_v57 = vsel %vm621_vm13, nan, %v631_v27  ;;  %v840_v40 = vsel %vm829_vm10, nan, %v839_v24  ;;  %v1048_v22 = vsel %vm1037_vm14, nan, %v1047_v26  ;;  %v1151_v60 = vsel %vm1144_vm3, %v1147_v5, %v1150_v34 }
 0x1c3   : > { %v2468_v46 = vpack.c.bf16 %v840_v40, %v632_v57  ;;  %vm4528_vm7 = vweird.f32 %v4498_v53  ;;  %v2472_v33 = vpack.c.bf16 %v1256_v45, %v1048_v22  ;;  %vm936_vm8 = vcmp.lt.s32.totalorder %v935_v50, 2  ;;  %v1257_v53 = vld [vmem:[%s4404_s3] sm:$0xff] }
 0x1c4   : > { %v528_v7 = vsel %vm4528_vm7, nan, %v3632_v21  ;;  %v943_v11 = vsel %vm936_vm8, %v939_v44, %v942_v9  ;;  %vm1141_vm9 = vweird.f32 %v4507_v32  ;;  %vm933_vm11 = vweird.f32 %v4491_v17  ;;  %v1258_v32 = vld [vmem:[%s4404_s3 + $0x8] sm:$0xff]  ;;  %v1259_v17 = vld [vmem:[%s4404_s3 + $0x10] sm:$0xff] }
 0x1c5   : > { %v2470_v58 = vpack.c.bf16 %v736_v31, %v528_v7  ;;  %2469 = vmatprep.subr.bf16.mxu1 %v2468_v46  ;;  %v1152_v30 = vsel %vm1141_vm9, nan, %v1151_v60  ;;  %v944_v23 = vsel %vm933_vm11, nan, %v943_v11  ;;  %vm1285_vm13 = vcmask 261120  }
 0x1c6   : > { %v2474_v18 = vpack.c.bf16 %v1152_v30, %v944_v23  ;;  %v4529_v8 = vmov 0.0   ;;  %v4530_v60 = vmov 920167782   ;;  %v4531_v23 = vmov 1326507024  }
 0x1c7   : > { %2471 = vmatpush1.bf16.msra.mxu1 %v2470_v58 }
 0x1c8   : > { %2473 = vmatprep.subr.bf16.mxu1 %v2472_v33 }
 0x1cb   : > { %2475 = vmatpush1.bf16.msra.mxu1 %v2474_v18 }
 0x1ce   : > { %2425 = vmatmul.mubr.msk.f32.vlgmr.msra.gmra.mrb[0].mxu1 %vm1285_vm13, %v1257_v53 }
 0x1cf   : > { %1368 = vmatprep.mubr.f32.mxu1 %v4529_v8 }
 0x1d2   : > { %2426 = vmatmul.mubr.msk.f32.gmra.mrb[2].mxu1 %vm1285_vm13, %v1258_v32 }
 0x1d3   : > { %1374 = vmatprep.mubr.f32.mxu1 %v4529_v8 }
 0x1d6   : > { %2427 = vmatmul.mubr.msk.f32.gmra.mrb[4].mxu1 %vm1285_vm13, %v1259_v17 }
 0x1d7   : > { %1380 = vmatprep.mubr.f32.mxu1 %v4529_v8 }
 0x1da   : > { %2428 = vmatmul.mubr.msk.f32.gmra.mrb[6].mxu1 %vm1285_vm13, %v1260_v59 }
 0x2a1   : > { %v1364_v21 = vpop.f32.mrb[0].mxu1 }
 0x2a2   : > { %v3700_v63 = vadd.f32 %v1364_v21, %v1268_v42  ;;  %v1366_v36 = vpop.f32.mrb[1].mxu1 }
 0x2a3   : > { %v3702_v62 = vadd.f32 %v1366_v36, %v1268_v42 }
 0x2a4   : > { %v1387_v2 = vand.u32 2147483647, %v3700_v63  ;;  %v1390_v39 = vand.u32 2139095040, %v3700_v63 }
 0x2a5   : > { %v1491_v56 = vand.u32 2147483647, %v3702_v62  ;;  %v1494_v25 = vand.u32 2139095040, %v3702_v62  ;;  %v1370_v29 = vpop.f32.mrb[2].mxu1 }
 0x2a6   : > { %v1391_v47 = vshrl.u32 %v1390_v39, 23  ;;  %v3708_v51 = vadd.f32 %v1370_v29, %v1273_v43  ;;  %v1372_v16 = vpop.f32.mrb[3].mxu1  ;;  %v1394_v38 = vand.u32 8388607, %v1387_v2 }
 0x2a7   : > { %v1495_v31 = vshrl.u32 %v1494_v25, 23  ;;  %v1498_v19 = vand.u32 8388607, %v1491_v56  ;;  %v3721_v26 = vadd.f32 %v1372_v16, %v1273_v43 }
 0x2a8   : > { %v2429_v48 = vadd.s32 4294967169, %v1391_v47  ;;  %v1598_v49 = vand.u32 2139095040, %v3708_v51  ;;  %v1395_v0 = vor.u32 8388608, %v1394_v38  ;;  %v4461_v1 = vand.u32 2147483647, %v3708_v51 }
 0x2a9   : > { %v2433_v20 = vadd.s32 4294967169, %v1495_v31  ;;  %v3715_v37 = vpop.f32.mrb[4].mxu1  ;;  %v1499_v35 = vor.u32 8388608, %v1498_v19 }
 0x2aa   : > { %v1397_v3 = vadd.s32 1, %v2429_v48  ;;  %v1599_v61 = vshrl.u32 %v1598_v49, 23  ;;  %v3717_v50 = vpop.f32.mrb[5].mxu1  ;;  %v3725_v10 = vshll.u32 %v1395_v0, 8 }
 0x2ab   : > { %v1501_v4 = vadd.s32 1, %v2433_v20  ;;  %v3729_v34 = vshll.u32 %v1499_v35, 8 }
 0x2ac   : > { %vm1398_vm10 = vcmp.gt.s32.totalorder %v1397_v3, 0  ;;  %v2437_v54 = vadd.s32 4294967169, %v1599_v61 }
 0x2ad   : > { %v1399_v6 = vsel %vm1398_vm10, %v1397_v3, 0  ;;  %vm1502_vm14 = vcmp.gt.s32.totalorder %v1501_v4, 0  ;;  %v3719_v55 = vpop.f32.mrb[6].mxu1 }
 0x2ae   : > { %v1400_v12 = vshrl.u32 %v1399_v6, 5  ;;  %v1401_v15 = vand.u32 31, %v1399_v6  ;;  %v1503_v28 = vsel %vm1502_vm14, %v1501_v4, 0  ;;  %v3723_v27 = vpop.f32.mrb[7].mxu1  ;;  %v3733_v9 = vadd.s32 1, %v2437_v54 }
 0x2af   : > { %v3727_v5 = vshrl.u32 %v1503_v28, 5  ;;  %v1505_v44 = vand.u32 31, %v1503_v28 }
 0x2b0   : > { %v1402_v45 = vsub.s32 32, %v1401_v15  ;;  %v1404_v24 = vshll.u32 %v4486_v52, %v1401_v15  ;;  %v1407_v57 = vshll.u32 %v4483_v14, %v1401_v15  ;;  %v1410_v40 = vshll.u32 %v4484_v41, %v1401_v15 }
 0x2b1   : > { %v1413_v22 = vshll.u32 %v4478_v13, %v1401_v15  ;;  %v1416_v46 = vshll.u32 %v4530_v60, %v1401_v15  ;;  %vm1419_vm2 = vcmp.lt.s32.totalorder %v1400_v12, 1  ;;  %vm1420_vm4 = vcmp.lt.s32.totalorder %v1400_v12, 2 }
 0x2b2   : > { %v1405_v7 = vshrl.u32 %v4483_v14, %v1402_v45  ;;  %v1408_v33 = vshrl.u32 %v4484_v41, %v1402_v45  ;;  %v1411_v58 = vshrl.u32 %v4478_v13, %v1402_v45  ;;  %v1403_v11 = vshrl.u32 %v4486_v52, %v1402_v45 }
 0x2b3   : > { %v1414_v30 = vshrl.u32 %v4530_v60, %v1402_v45  ;;  %v1417_v18 = vshrl.u32 %v4531_v23, %v1402_v45  ;;  %v1506_v17 = vsub.s32 32, %v1505_v44  ;;  %vm1421_vm5 = vcmp.lt.s32.totalorder %v1400_v12, 3 }
 0x2b4   : > { %v1406_v53 = vor.u32 %v1405_v7, %v1404_v24  ;;  %v1409_v8 = vor.u32 %v1408_v33, %v1407_v57  ;;  %v1412_v32 = vor.u32 %v1411_v58, %v1410_v40  ;;  %vm1422_vm15 = vcmp.lt.s32.totalorder %v1400_v12, 4 }
 0x2b5   : > { %v1415_v59 = vor.u32 %v1414_v30, %v1413_v22  ;;  %v1418_v42 = vor.u32 %v1417_v18, %v1416_v46  ;;  %v1508_v16 = vshll.u32 %v4486_v52, %v1505_v44  ;;  %v1509_v19 = vshrl.u32 %v4483_v14, %v1506_v17 }
 0x2b6   : > { %v1423_v21 = vsel %vm1419_vm2, %v1403_v11, %v1406_v53  ;;  %v1424_v36 = vsel %vm1422_vm15, %v1412_v32, 2102212464  ;;  %v1427_v39 = vsel %vm1419_vm2, %v1406_v53, %v1409_v8  ;;  %v1431_v43 = vsel %vm1419_vm2, %v1409_v8, %v1412_v32 }
 0x2b7   : > { %v1425_v25 = vsel %vm1421_vm5, %v1409_v8, %v1424_v36  ;;  %v1428_v29 = vsel %vm1422_vm15, %v1415_v59, 920167782  ;;  %v1432_v47 = vsel %vm1422_vm15, %v1418_v42, 1326507024  ;;  %v1511_v48 = vshll.u32 %v4483_v14, %v1505_v44 }
 0x2b8   : > { %v1429_v38 = vsel %vm1421_vm5, %v1412_v32, %v1428_v29  ;;  %v1433_v31 = vsel %vm1421_vm5, %v1415_v59, %v1432_v47  ;;  %v1426_v20 = vsel %vm1420_vm4, %v1423_v21, %v1425_v25  ;;  %v1512_v0 = vshrl.u32 %v4484_v41, %v1506_v17 }
 0x2b9   : > { %v1430_v49 = vsel %vm1420_vm4, %v1427_v39, %v1429_v38  ;;  %v1434_v3 = vsel %vm1420_vm4, %v1431_v43, %v1433_v31  ;;  %v1510_v54 = vor.u32 %v1509_v19, %v1508_v16  ;;  %v1514_v28 = vshll.u32 %v4484_v41, %v1505_v44 }
 0x2ba   : > { %v3756_v35 = vmul.u32.u64.low %v3725_v10, %v1434_v3  ;;  %v3757_v4 = vmul.u32.u64.high %v3725_v10, %v1434_v3, %v3756_v35  ;;  %v3760_v61 = vmul.u32.u64.low %v3725_v10, %v1430_v49  ;;  %v3761_v6 = vmul.u32.u64.high %v3725_v10, %v1430_v49, %v3760_v61 }
 0x2bb   : > { %v1513_v15 = vor.u32 %v1512_v0, %v1511_v48  ;;  %v1515_v45 = vshrl.u32 %v4478_v13, %v1506_v17  ;;  %v1507_v12 = vshrl.u32 %v4486_v52, %v1506_v17  ;;  %v1517_v24 = vshll.u32 %v4478_v13, %v1505_v44 }
 0x2bc   : > { %v1518_v57 = vshrl.u32 %v4530_v60, %v1506_v17  ;;  %v1521_v40 = vshrl.u32 %v4531_v23, %v1506_v17  ;;  %v1442_v22 = vmul.u32 %v3725_v10, %v1426_v20  ;;  %v1520_v7 = vshll.u32 %v4530_v60, %v1505_v44 }
 0x2bd   : > { %v1516_v46 = vor.u32 %v1515_v45, %v1514_v28  ;;  %vm1523_vm12 = vcmp.lt.s32.totalorder %v3727_v5, 1  ;;  %vm1444_vm0 = vc.u32 %v3757_v4, %v3760_v61  ;;  %v1445_v33 = vadd.s32 1, %v3761_v6 }
 0x2be   : > { %v1519_v58 = vor.u32 %v1518_v57, %v1517_v24  ;;  %vm1524_vm1 = vcmp.lt.s32.totalorder %v3727_v5, 2  ;;  %v1522_v11 = vor.u32 %v1521_v40, %v1520_v7  ;;  %vm1525_vm6 = vcmp.lt.s32.totalorder %v3727_v5, 3 }
 0x2bf   : > { %vm1526_vm3 = vcmp.lt.s32.totalorder %v3727_v5, 4  ;;  %v1531_v30 = vsel %vm1523_vm12, %v1510_v54, %v1513_v15  ;;  %v1446_v10 = vsel %vm1444_vm0, %v1445_v33, %v3761_v6  ;;  %v1535_v53 = vsel %vm1523_vm12, %v1513_v15, %v1516_v46 }
 0x2c0   : > { %v1528_v18 = vsel %vm1526_vm3, %v1516_v46, 2102212464  ;;  %v1532_v44 = vsel %vm1526_vm3, %v1519_v58, 920167782  ;;  %v1447_v8 = vadd.s32 %v1446_v10, %v1442_v22  ;;  %v1527_v32 = vsel %vm1523_vm12, %v1507_v12, %v1510_v54 }
 0x2c1   : > { %v1533_v17 = vsel %vm1525_vm6, %v1516_v46, %v1532_v44  ;;  %v1536_v59 = vsel %vm1526_vm3, %v1522_v11, 1326507024  ;;  %v1529_v42 = vsel %vm1525_vm6, %v1513_v15, %v1528_v18  ;;  %vm1606_vm7 = vcmp.gt.s32.totalorder %v3733_v9, 0 }
 0x2c2   : > { %v1534_v21 = vsel %vm1524_vm1, %v1531_v30, %v1533_v17  ;;  %v1537_v36 = vsel %vm1525_vm6, %v1519_v58, %v1536_v59  ;;  %v1448_v39 = vadd.s32 536870912, %v1447_v8  ;;  %v1602_v38 = vand.u32 8388607, %v4461_v1 }
 0x2c3   : > { %v1538_v43 = vsel %vm1524_vm1, %v1535_v53, %v1537_v36  ;;  %v3786_v25 = vmul.u32.u64.low %v3729_v34, %v1534_v21  ;;  %v3787_v29 = vmul.u32.u64.high %v3729_v34, %v1534_v21, %v3786_v25  ;;  %v1607_v31 = vsel %vm1606_vm7, %v3733_v9, 0 }
 0x2c4   : > { %v3791_v47 = vmul.u32.u64.low %v3729_v34, %v1538_v43  ;;  %v3792_v16 = vmul.u32.u64.high %v3729_v34, %v1538_v43, %v3791_v47  ;;  %v3797_v19 = vshrl.u32 %v1448_v39, 30  ;;  %v1530_v48 = vsel %vm1524_vm1, %v1527_v32, %v1529_v42 }
 0x2c5   : > { %v1609_v20 = vand.u32 31, %v1607_v31  ;;  %v1702_v49 = vand.u32 2139095040, %v3721_v26  ;;  %v1549_v0 = vadd.s32 1, %v3787_v29  ;;  %v1546_v6 = vmul.u32 %v3729_v34, %v1530_v48 }
 0x2c6   : > { %v1450_v3 = vshll.u32 %v3797_v19, 30  ;;  %vm1548_vm8 = vc.u32 %v3792_v16, %v3786_v25  ;;  %v1603_v54 = vor.u32 8388608, %v1602_v38  ;;  %v1608_v40 = vshrl.u32 %v1607_v31, 5 }
 0x2c7   : > { %v1610_v35 = vsub.s32 32, %v1609_v20  ;;  %v1550_v15 = vsel %vm1548_vm8, %v1549_v0, %v3787_v29  ;;  %v1703_v5 = vshrl.u32 %v1702_v49, 23  ;;  %v1612_v45 = vshll.u32 %v4486_v52, %v1609_v20 }
 0x2c8   : > { %v3807_v9 = vsub.s32 %v1447_v8, %v1450_v3  ;;  %v1551_v28 = vadd.s32 %v1550_v15, %v1546_v6  ;;  %v1615_v34 = vshll.u32 %v4483_v14, %v1609_v20  ;;  %v1618_v33 = vshll.u32 %v4484_v41, %v1609_v20 }
 0x2c9   : > { %v1613_v12 = vshrl.u32 %v4483_v14, %v1610_v35  ;;  %v1616_v24 = vshrl.u32 %v4484_v41, %v1610_v35  ;;  %v1619_v22 = vshrl.u32 %v4478_v13, %v1610_v35  ;;  %v1643_v58 = vshll.u32 %v1603_v54, 8 }
 0x2ca   : > { %v1453_v57 = vsub.s32 0, %v3807_v9  ;;  %v1552_v46 = vadd.s32 536870912, %v1551_v28  ;;  %v1621_v10 = vshll.u32 %v4478_v13, %v1609_v20  ;;  %v1622_v18 = vshrl.u32 %v4530_v60, %v1610_v35 }
 0x2cb   : > { %v1614_v7 = vor.u32 %v1613_v12, %v1612_v45  ;;  %v1617_v30 = vor.u32 %v1616_v24, %v1615_v34  ;;  %v1620_v53 = vor.u32 %v1619_v22, %v1618_v33  ;;  %v1624_v8 = vshll.u32 %v4530_v60, %v1609_v20 }
 0x2cc   : > { %v2430_v11 = vmin.u32 %v1453_v57, %v3807_v9  ;;  %v3820_v44 = vshrl.u32 %v1552_v46, 30  ;;  %v1625_v32 = vshrl.u32 %v4531_v23, %v1610_v35  ;;  %v1623_v59 = vor.u32 %v1622_v18, %v1621_v10 }
 0x2cd   : > { %vm1627_vm9 = vcmp.lt.s32.totalorder %v1608_v40, 1  ;;  %v2441_v42 = vadd.s32 4294967169, %v1703_v5  ;;  %vm1628_vm11 = vcmp.lt.s32.totalorder %v1608_v40, 2  ;;  %vm1630_vm10 = vcmp.lt.s32.totalorder %v1608_v40, 4 }
 0x2ce   : > { %v1455_v17 = vclz %v2430_v11  ;;  %v1554_v21 = vshll.u32 %v3820_v44, 30  ;;  %v1626_v36 = vor.u32 %v1625_v32, %v1624_v8  ;;  %vm1629_vm14 = vcmp.lt.s32.totalorder %v1608_v40, 3 }
 0x2cf   : > { %v1635_v43 = vsel %vm1627_vm9, %v1614_v7, %v1617_v30  ;;  %v1636_v29 = vsel %vm1630_vm10, %v1623_v59, 920167782  ;;  %v1632_v38 = vsel %vm1630_vm10, %v1620_v53, 2102212464  ;;  %v1639_v48 = vsel %vm1627_vm9, %v1617_v30, %v1620_v53 }
 0x2d0   : > { %v2431_v39 = vadd.s32 4294967294, %v1455_v17  ;;  %v3826_v47 = vsub.s32 %v1551_v28, %v1554_v21  ;;  %v1637_v31 = vsel %vm1629_vm14, %v1620_v53, %v1636_v29  ;;  %v1611_v20 = vshrl.u32 %v4486_v52, %v1610_v35 }
 0x2d1   : > { %v1638_v49 = vsel %vm1628_vm11, %v1635_v43, %v1637_v31  ;;  %v1640_v3 = vsel %vm1630_vm10, %v1626_v36, 1326507024  ;;  %v1709_v15 = vadd.s32 1, %v2441_v42  ;;  %v1633_v45 = vsel %vm1629_vm14, %v1617_v30, %v1632_v38  ;;  %v1278_v43 = vpop.permute.xlu0 %1277 }
 0x2d2   : > { %vm2432_vm2 = vcmp.lt.s32.totalorder %v2431_v39, 0  ;;  %v1557_v6 = vsub.s32 0, %v3826_v47  ;;  %v1641_v54 = vsel %vm1629_vm14, %v1623_v59, %v1640_v3  ;;  %v1631_v28 = vsel %vm1627_vm9, %v1611_v20, %v1614_v7 }
 0x2d3   : > { %v1458_v0 = vsel %vm2432_vm2, 0, %v2431_v39  ;;  %v1642_v12 = vsel %vm1628_vm11, %v1639_v48, %v1641_v54  ;;  %vm1710_vm4 = vcmp.gt.s32.totalorder %v1709_v15, 0  ;;  %v4460_v33 = vand.u32 2147483647, %v3721_v26 }
 0x2d4   : > { %v1463_v5 = vsub.s32 4294967266, %v1458_v0  ;;  %v2434_v24 = vmin.u32 %v1557_v6, %v3826_v47  ;;  %v3838_v57 = vmul.u32.u64.low %v1643_v58, %v1642_v12  ;;  %v3839_v35 = vmul.u32.u64.high %v1643_v58, %v1642_v12, %v3838_v57 }
 0x2d5   : > { %v3841_v34 = vmul.u32.u64.low %v1643_v58, %v1638_v49  ;;  %v3842_v22 = vmul.u32.u64.high %v1643_v58, %v1638_v49, %v3841_v34  ;;  %v1711_v11 = vsel %vm1710_vm4, %v1709_v15, 0  ;;  %v1459_v10 = vsub.s32 32, %v1458_v0 }
 0x2d6   : > { %v1559_v46 = vclz %v2434_v24  ;;  %v1464_v7 = vadd.s32 127, %v1463_v5  ;;  %v1634_v30 = vsel %vm1628_vm11, %v1631_v28, %v1633_v45  ;;  %v1713_v18 = vand.u32 31, %v1711_v11 }
 0x2d7   : > { %vm1652_vm5 = vc.u32 %v3839_v35, %v3841_v34  ;;  %v1443_v8 = vadd.s32 %v3760_v61, %v3757_v4  ;;  %v1653_v32 = vadd.s32 1, %v3842_v22  ;;  %v1650_v17 = vmul.u32 %v1643_v58, %v1634_v30 }
 0x2d8   : > { %v2435_v53 = vadd.s32 4294967294, %v1559_v46  ;;  %v1706_v59 = vand.u32 8388607, %v4460_v33  ;;  %v1465_v21 = vshll.u32 %v1464_v7, 23  ;;  %v1714_v36 = vsub.s32 32, %v1713_v18 }
 0x2d9   : > { %v1461_v42 = vshrl.u32 %v1443_v8, %v1459_v10  ;;  %v1654_v40 = vsel %vm1652_vm5, %v1653_v32, %v3842_v22  ;;  %v1460_v29 = vshll.u32 %v3807_v9, %v1458_v0  ;;  %v3857_v4 = vadd.f32 %v3715_v37, %v1278_v43 }
 0x2da   : > { %vm2436_vm15 = vcmp.lt.s32.totalorder %v2435_v53, 0  ;;  %v1655_v39 = vadd.s32 %v1654_v40, %v1650_v17  ;;  %v1707_v48 = vor.u32 8388608, %v1706_v59  ;;  %v1466_v58 = vor.u32 4788187, %v1465_v21 }
 0x2db   : > { %v1562_v38 = vsel %vm2436_vm15, 0, %v2435_v53  ;;  %v1462_v61 = vor.u32 %v1461_v42, %v1460_v29  ;;  %v1717_v20 = vshrl.u32 %v4483_v14, %v1714_v36  ;;  %v1720_v49 = vshrl.u32 %v4484_v41, %v1714_v36 }
 0x2dc   : > { %v1656_v31 = vadd.s32 536870912, %v1655_v39  ;;  %v1567_v3 = vsub.s32 4294967266, %v1562_v38  ;;  %v1723_v54 = vshrl.u32 %v4478_v13, %v1714_v36  ;;  %v1726_v15 = vshrl.u32 %v4530_v60, %v1714_v36 }
 0x2dd   : > { %v1716_v9 = vshll.u32 %v4486_v52, %v1713_v18  ;;  %v1719_v0 = vshll.u32 %v4483_v14, %v1713_v18  ;;  %v1725_v37 = vshll.u32 %v4478_v13, %v1713_v18  ;;  %v1729_v5 = vshrl.u32 %v4531_v23, %v1714_v36 }
 0x2de   : > { %v3861_v6 = vshrl.u32 %v1656_v31, 30  ;;  %v1712_v45 = vshrl.u32 %v1711_v11, 5  ;;  %v1722_v12 = vshll.u32 %v4484_v41, %v1713_v18  ;;  %v3872_v24 = vadd.f32 %v3717_v50, %v1278_v43 }
 0x2df   : > { %v1718_v57 = vor.u32 %v1717_v20, %v1716_v9  ;;  %v1721_v22 = vor.u32 %v1720_v49, %v1719_v0  ;;  %v1727_v46 = vor.u32 %v1726_v15, %v1725_v37  ;;  %v1728_v10 = vshll.u32 %v4530_v60, %v1713_v18 }
 0x2e0   : > { %v1658_v28 = vshll.u32 %v3861_v6, 30  ;;  %v1547_v7 = vadd.s32 %v3786_v25, %v3792_v16  ;;  %v1568_v30 = vadd.s32 127, %v1567_v3  ;;  %v1724_v8 = vor.u32 %v1723_v54, %v1722_v12 }
 0x2e1   : > { %v1467_v32 = vand.u32 2147483647, %v1466_v58  ;;  %v1469_v17 = vcvt.s32.f32 %v1462_v61  ;;  %v1730_v11 = vor.u32 %v1729_v5, %v1728_v10  ;;  %v1747_v59 = vshll.u32 %v1707_v48, 8 }
 0x2e2   : > { %v3877_v53 = vsub.s32 %v1655_v39, %v1658_v28  ;;  %v1563_v42 = vsub.s32 32, %v1562_v38  ;;  %vm1731_vm12 = vcmp.lt.s32.totalorder %v1712_v45, 1  ;;  %vm1734_vm0 = vcmp.lt.s32.totalorder %v1712_v45, 4 }
 0x2e3   : > { %v1715_v21 = vshrl.u32 %v4486_v52, %v1714_v36  ;;  %vm1733_vm1 = vcmp.lt.s32.totalorder %v1712_v45, 3  ;;  %v1739_v18 = vsel %vm1731_vm12, %v1718_v57, %v1721_v22  ;;  %v1740_v40 = vsel %vm1734_vm0, %v1727_v46, 920167782 }
 0x2e4   : > { %v1661_v50 = vsub.s32 0, %v3877_v53  ;;  %v1569_v25 = vshll.u32 %v1568_v30, 23  ;;  %vm1732_vm6 = vcmp.lt.s32.totalorder %v1712_v45, 2  ;;  %v1736_v16 = vsel %vm1734_vm0, %v1724_v8, 2102212464 }
 0x2e5   : > { %v1741_v39 = vsel %vm1733_vm1, %v1724_v8, %v1740_v40  ;;  %v1743_v31 = vsel %vm1731_vm12, %v1721_v22, %v1724_v8  ;;  %v1744_v48 = vsel %vm1734_vm0, %v1730_v11, 1326507024  ;;  %v1564_v61 = vshll.u32 %v3826_v47, %v1562_v38 }
 0x2e6   : > { %v2438_v43 = vmin.u32 %v1661_v50, %v3877_v53  ;;  %v1742_v29 = vsel %vm1732_vm6, %v1739_v18, %v1741_v39  ;;  %v1565_v58 = vshrl.u32 %v1547_v7, %v1563_v42  ;;  %v1735_v36 = vsel %vm1731_vm12, %v1715_v21, %v1718_v57  ;;  %v3912_v39 = vpop.permute.xlu1 %1282 }
 0x2e7   : > { %v1745_v20 = vsel %vm1733_vm1, %v1727_v46, %v1744_v48  ;;  %v1737_v49 = vsel %vm1733_vm1, %v1721_v22, %v1736_v16  ;;  %v3888_v54 = vmul.u32.u64.low %v1747_v59, %v1742_v29  ;;  %v3889_v15 = vmul.u32.u64.high %v1747_v59, %v1742_v29, %v3888_v54 }
 0x2e8   : > { %v1746_v3 = vsel %vm1732_vm6, %v1743_v31, %v1745_v20  ;;  %v1470_v9 = vmul.f32 %v1469_v17, %v1467_v32  ;;  %v1570_v0 = vor.u32 4788187, %v1569_v25  ;;  %v1663_v28 = vclz %v2438_v43 }
 0x2e9   : > { %v3892_v37 = vmul.u32.u64.low %v1747_v59, %v1746_v3  ;;  %v3893_v5 = vmul.u32.u64.high %v1747_v59, %v1746_v3, %v3892_v37  ;;  %v1806_v12 = vand.u32 2139095040, %v3857_v4  ;;  %v1566_v47 = vor.u32 %v1565_v58, %v1564_v61 }
 0x2ea   : > { %v1738_v38 = vsel %vm1732_vm6, %v1735_v36, %v1737_v49  ;;  %v1910_v57 = vand.u32 2139095040, %v3872_v24  ;;  %v1757_v22 = vadd.s32 1, %v3889_v15  ;;  %v1471_v10 = vxor.u32 2147483648, %v1470_v9 }
 0x2eb   : > { %v1807_v46 = vshrl.u32 %v1806_v12, 23  ;;  %v1473_v7 = vsub.s32 4, %v3797_v19  ;;  %v1571_v30 = vand.u32 2147483647, %v1570_v0  ;;  %v4459_v8 = vand.u32 2147483647, %v3857_v4 }
 0x2ec   : > { %v2439_v32 = vadd.s32 4294967294, %v1663_v28  ;;  %v1754_v17 = vmul.u32 %v1747_v59, %v1738_v38  ;;  %vm1756_vm3 = vc.u32 %v3893_v5, %v3888_v54  ;;  %v1573_v42 = vcvt.s32.f32 %v1566_v47 }
 0x2ed   : > { %v2445_v11 = vadd.s32 4294967169, %v1807_v46  ;;  %v1758_v45 = vsel %vm1756_vm3, %v1757_v22, %v3889_v15  ;;  %v1911_v50 = vshrl.u32 %v1910_v57, 23  ;;  %vm1389_vm7 = vcmp.lt.s32.totalorder %v3700_v63, 0 }
 0x2ee   : > { %v1759_v21 = vadd.s32 %v1758_v45, %v1754_v17  ;;  %v1472_v40 = vsel %vm1389_vm7, %v1471_v10, %v1470_v9  ;;  %v3906_v25 = vsel %vm1389_vm7, %v1473_v7, %v3797_v19  ;;  %v3908_v16 = vmul.f32 %v1573_v42, %v1571_v30 }
 0x2ef   : > { %v1813_v18 = vadd.s32 1, %v2445_v11  ;;  %v1810_v59 = vand.u32 8388607, %v4459_v8  ;;  %vm2440_vm8 = vcmp.lt.s32.totalorder %v2439_v32, 0  ;;  %v2449_v29 = vadd.s32 4294967169, %v1911_v50 }
 0x2f0   : > { %v1760_v43 = vadd.s32 536870912, %v1759_v21  ;;  %vm3916_vm11 = vcmp.le.f32.partialorder %v1387_v2, 0.7853982  ;;  %v3922_v19 = vadd.f32 %v3719_v55, %v3912_v39  ;;  %v3929_v58 = vadd.s32 %v3841_v34, %v3839_v35 }
 0x2f1   : > { %vm1814_vm9 = vcmp.gt.s32.totalorder %v1813_v18, 0  ;;  %v3936_v2 = vsel %vm3916_vm11, %v3700_v63, %v1472_v40  ;;  %v1575_v49 = vxor.u32 2147483648, %v3908_v16  ;;  %v3939_v55 = vsel %vm2440_vm8, 0, %v2439_v32 }
 0x2f2   : > { %v1815_v48 = vsel %vm1814_vm9, %v1813_v18, 0  ;;  %v3931_v36 = vshrl.u32 %v1760_v43, 30  ;;  %v1811_v9 = vor.u32 8388608, %v1810_v59  ;;  %v1917_v35 = vadd.s32 1, %v2449_v29 }
 0x2f3   : > { %v1817_v20 = vand.u32 31, %v1815_v48  ;;  %v1816_v34 = vshrl.u32 %v1815_v48, 5  ;;  %v4458_v42 = vand.u32 2147483647, %v3872_v24  ;;  %vm1493_vm10 = vcmp.lt.s32.totalorder %v3702_v62, 0 }
 0x2f4   : > { %v1762_v15 = vshll.u32 %v3931_v36, 30  ;;  %v1671_v45 = vsub.s32 4294967266, %v3939_v55  ;;  %v1851_v59 = vshll.u32 %v1811_v9, 8  ;;  %vm1918_vm2 = vcmp.gt.s32.totalorder %v1917_v35, 0 }
 0x2f5   : > { %v1818_v0 = vsub.s32 32, %v1817_v20  ;;  %v1820_v37 = vshll.u32 %v4486_v52, %v1817_v20  ;;  %v1823_v28 = vshll.u32 %v4483_v14, %v1817_v20  ;;  %v1826_v12 = vshll.u32 %v4484_v41, %v1817_v20 }
 0x2f6   : > { %v3946_v47 = vsub.s32 %v1759_v21, %v1762_v15  ;;  %v1829_v22 = vshll.u32 %v4478_v13, %v1817_v20  ;;  %v1832_v7 = vshll.u32 %v4530_v60, %v1817_v20  ;;  %vm1835_vm14 = vcmp.lt.s32.totalorder %v1816_v34, 1 }
 0x2f7   : > { %v1821_v38 = vshrl.u32 %v4483_v14, %v1818_v0  ;;  %v1824_v57 = vshrl.u32 %v4484_v41, %v1818_v0  ;;  %v1827_v46 = vshrl.u32 %v4478_v13, %v1818_v0  ;;  %v1830_v10 = vshrl.u32 %v4530_v60, %v1818_v0 }
 0x2f8   : > { %v1833_v30 = vshrl.u32 %v4531_v23, %v1818_v0  ;;  %v1765_v32 = vsub.s32 0, %v3946_v47  ;;  %v1819_v43 = vshrl.u32 %v4486_v52, %v1818_v0  ;;  %vm1836_vm4 = vcmp.lt.s32.totalorder %v1816_v34, 2 }
 0x2f9   : > { %v1822_v17 = vor.u32 %v1821_v38, %v1820_v37  ;;  %v1825_v11 = vor.u32 %v1824_v57, %v1823_v28  ;;  %v1828_v50 = vor.u32 %v1827_v46, %v1826_v12  ;;  %v1831_v21 = vor.u32 %v1830_v10, %v1829_v22 }
 0x2fa   : > { %v1834_v18 = vor.u32 %v1833_v30, %v1832_v7  ;;  %v2442_v40 = vmin.u32 %v1765_v32, %v3946_v47  ;;  %vm1838_vm5 = vcmp.lt.s32.totalorder %v1816_v34, 4  ;;  %vm1837_vm15 = vcmp.lt.s32.totalorder %v1816_v34, 3 }
 0x2fb   : > { %v1843_v29 = vsel %vm1835_vm14, %v1822_v17, %v1825_v11  ;;  %v1840_v20 = vsel %vm1838_vm5, %v1828_v50, 2102212464  ;;  %v1844_v15 = vsel %vm1838_vm5, %v1831_v21, 920167782  ;;  %v1839_v37 = vsel %vm1835_vm14, %v1819_v43, %v1822_v17 }
 0x2fc   : > { %v1767_v48 = vclz %v2442_v40  ;;  %v1845_v28 = vsel %vm1837_vm15, %v1828_v50, %v1844_v15  ;;  %v1847_v38 = vsel %vm1835_vm14, %v1825_v11, %v1828_v50  ;;  %v1848_v12 = vsel %vm1838_vm5, %v1834_v18, 1326507024 }
 0x2fd   : > { %v1841_v22 = vsel %vm1837_vm15, %v1825_v11, %v1840_v20  ;;  %v1846_v46 = vsel %vm1836_vm4, %v1843_v29, %v1845_v28  ;;  %v1849_v10 = vsel %vm1837_vm15, %v1831_v21, %v1848_v12  ;;  %v1672_v9 = vadd.s32 127, %v1671_v45 }
 0x2fe   : > { %v2443_v57 = vadd.s32 4294967294, %v1767_v48  ;;  %v1850_v7 = vsel %vm1836_vm4, %v1847_v38, %v1849_v10  ;;  %v3963_v0 = vmul.u32.u64.low %v1851_v59, %v1846_v46  ;;  %v3964_v30 = vmul.u32.u64.high %v1851_v59, %v1846_v46, %v3963_v0 }
 0x2ff   : > { %v3967_v32 = vmul.u32.u64.low %v1851_v59, %v1850_v7  ;;  %v3968_v40 = vmul.u32.u64.high %v1851_v59, %v1850_v7, %v3967_v32  ;;  %v1919_v17 = vsel %vm1918_vm2, %v1917_v35, 0  ;;  %v1842_v11 = vsel %vm1836_vm4, %v1839_v37, %v1841_v22 }
 0x300   : > { %vm2444_vm12 = vcmp.lt.s32.totalorder %v2443_v57, 0  ;;  %v1914_v21 = vand.u32 8388607, %v4458_v42  ;;  %v1921_v45 = vand.u32 31, %v1919_v17  ;;  %v3979_v18 = vsel %vm1493_vm10, %v1575_v49, %v3908_v16 }
 0x301   : > { %v3971_v50 = vsel %vm2444_vm12, 0, %v2443_v57  ;;  %v1667_v43 = vsub.s32 32, %v3939_v55  ;;  %v2014_v48 = vand.u32 2139095040, %v3922_v19  ;;  %v1861_v20 = vadd.s32 1, %v3964_v30 }
 0x302   : > { %v1775_v34 = vsub.s32 4294967266, %v3971_v50  ;;  %v1922_v15 = vsub.s32 32, %v1921_v45  ;;  %v1673_v37 = vshll.u32 %v1672_v9, 23  ;;  %v1755_v28 = vadd.s32 %v3888_v54, %v3893_v5 }
 0x303   : > { %v1858_v16 = vmul.u32 %v1851_v59, %v1842_v11  ;;  %vm1860_vm0 = vc.u32 %v3968_v40, %v3963_v0  ;;  %v1915_v38 = vor.u32 8388608, %v1914_v21  ;;  %v1771_v22 = vsub.s32 32, %v3971_v50 }
 0x304   : > { %v1862_v49 = vsel %vm1860_vm0, %v1861_v20, %v3964_v30  ;;  %v1925_v12 = vshrl.u32 %v4483_v14, %v1922_v15  ;;  %v1928_v57 = vshrl.u32 %v4484_v41, %v1922_v15  ;;  %v1920_v10 = vshrl.u32 %v1919_v17, 5 }
 0x305   : > { %v1863_v46 = vadd.s32 %v1862_v49, %v1858_v16  ;;  %v2015_v7 = vshrl.u32 %v2014_v48, 23  ;;  %v1776_v9 = vadd.s32 127, %v1775_v34  ;;  %v1924_v32 = vshll.u32 %v4486_v52, %v1921_v45 }
 0x306   : > { %v1927_v54 = vshll.u32 %v4483_v14, %v1921_v45  ;;  %v1931_v5 = vshrl.u32 %v4478_v13, %v1922_v15  ;;  %v1930_v30 = vshll.u32 %v4484_v41, %v1921_v45  ;;  %v1933_v11 = vshll.u32 %v4478_v13, %v1921_v45 }
 0x307   : > { %v1864_v59 = vadd.s32 536870912, %v1863_v46  ;;  %v1934_v21 = vshrl.u32 %v4530_v60, %v1922_v15  ;;  %vm4004_vm1 = vcmp.le.f32.partialorder %v1491_v56, 0.7853982  ;;  %v1926_v17 = vor.u32 %v1925_v12, %v1924_v32 }
 0x308   : > { %v1929_v48 = vor.u32 %v1928_v57, %v1927_v54  ;;  %v1936_v34 = vshll.u32 %v4530_v60, %v1921_v45  ;;  %v1937_v16 = vshrl.u32 %v4531_v23, %v1922_v15  ;;  %v1669_v49 = vshrl.u32 %v3929_v58, %v1667_v43 }
 0x309   : > { %v4011_v42 = vshrl.u32 %v1864_v59, 30  ;;  %v1932_v8 = vor.u32 %v1931_v5, %v1930_v30  ;;  %v1935_v61 = vor.u32 %v1934_v21, %v1933_v11  ;;  %v1674_v33 = vor.u32 4788187, %v1673_v37 }
 0x30a   : > { %v1938_v1 = vor.u32 %v1937_v16, %v1936_v34  ;;  %v1955_v3 = vshll.u32 %v1915_v38, 8  ;;  %v2453_v29 = vadd.s32 4294967169, %v2015_v7  ;;  %v1777_v56 = vshll.u32 %v1776_v9, 23 }
 0x30b   : > { %v1866_v35 = vshll.u32 %v4011_v42, 30  ;;  %vm1939_vm6 = vcmp.lt.s32.totalorder %v1920_v10, 1  ;;  %vm1942_vm3 = vcmp.lt.s32.totalorder %v1920_v10, 4  ;;  %vm1597_vm7 = vcmp.lt.s32.totalorder %v3708_v51, 0 }
 0x30c   : > { %v1772_v45 = vshll.u32 %v3946_v47, %v3971_v50  ;;  %v1773_v12 = vshrl.u32 %v1755_v28, %v1771_v22  ;;  %v1947_v58 = vsel %vm1939_vm6, %v1926_v17, %v1929_v48  ;;  %v1948_v43 = vsel %vm1942_vm3, %v1935_v61, 920167782 }
 0x30d   : > { %v4018_v57 = vsub.s32 %v1863_v46, %v1866_v35  ;;  %v1923_v37 = vshrl.u32 %v4486_v52, %v1922_v15  ;;  %vm1941_vm8 = vcmp.lt.s32.totalorder %v1920_v10, 3  ;;  %v1944_v38 = vsel %vm1942_vm3, %v1932_v8, 2102212464 }
 0x30e   : > { %vm1940_vm9 = vcmp.lt.s32.totalorder %v1920_v10, 2  ;;  %v1949_v7 = vsel %vm1941_vm8, %v1932_v8, %v1948_v43  ;;  %v1951_v9 = vsel %vm1939_vm6, %v1929_v48, %v1932_v8  ;;  %v1952_v32 = vsel %vm1942_vm3, %v1938_v1, 1326507024 }
 0x30f   : > { %v1778_v54 = vor.u32 4788187, %v1777_v56  ;;  %v1869_v5 = vsub.s32 0, %v4018_v57  ;;  %v1943_v47 = vsel %vm1939_vm6, %v1923_v37, %v1926_v17  ;;  %v1950_v50 = vsel %vm1940_vm9, %v1947_v58, %v1949_v7 }
 0x310   : > { %v1945_v28 = vsel %vm1941_vm8, %v1929_v48, %v1944_v38  ;;  %v1953_v22 = vsel %vm1941_vm8, %v1935_v61, %v1952_v32  ;;  %v4025_v35 = vmul.u32.u64.low %v1955_v3, %v1950_v50  ;;  %v4026_v46 = vmul.u32.u64.high %v1955_v3, %v1950_v50, %v4025_v35 }
 0x311   : > { %v1579_v15 = vsel %vm4004_vm1, %v3702_v62, %v3979_v18  ;;  %v2446_v1 = vmin.u32 %v1869_v5, %v4018_v57  ;;  %v1954_v8 = vsel %vm1940_vm9, %v1951_v9, %v1953_v22  ;;  %v2021_v59 = vadd.s32 1, %v2453_v29 }
 0x312   : > { %v4536_v30 = vshll.u32 %v3877_v53, %v3939_v55  ;;  %v1774_v21 = vor.u32 %v1773_v12, %v1772_v45  ;;  %v4038_v61 = vmul.u32.u64.low %v1955_v3, %v1954_v8  ;;  %v4039_v17 = vmul.u32.u64.high %v1955_v3, %v1954_v8, %v4038_v61 }
 0x313   : > { %v1675_v48 = vand.u32 2147483647, %v1674_v33  ;;  %v1871_v34 = vclz %v2446_v1  ;;  %v1946_v16 = vsel %vm1940_vm9, %v1943_v47, %v1945_v28  ;;  %vm2022_vm14 = vcmp.gt.s32.totalorder %v2021_v59, 0 }
 0x314   : > { %v1670_v11 = vor.u32 %v1669_v49, %v4536_v30  ;;  %v1779_v56 = vand.u32 2147483647, %v1778_v54  ;;  %v1965_v18 = vadd.s32 1, %v4026_v46  ;;  %v4537_v58 = vand.u32 2147483647, %v3922_v19 }
 0x315   : > { %v2023_v29 = vsel %vm2022_vm14, %v2021_v59, 0  ;;  %2629 = vcosq.f32 %v1579_v15  ;;  %v4538_v53 = vsub.s32 4, %v3861_v6  ;;  %v2447_v33 = vadd.s32 4294967294, %v1871_v34 }
 0x316   : > { %v2018_v43 = vand.u32 8388607, %v4537_v58  ;;  %v2025_v49 = vand.u32 31, %v2023_v29  ;;  %v1677_v10 = vcvt.s32.f32 %v1670_v11  ;;  %v1781_v45 = vcvt.s32.f32 %v1774_v21 }
 0x317   : > { %v4050_v55 = vsel %vm1597_vm7, %v4538_v53, %v3861_v6  ;;  %v1962_v12 = vmul.u32 %v1955_v3, %v1946_v16  ;;  %vm1964_vm2 = vc.u32 %v4039_v17, %v4025_v35  ;;  %2631 = vsinq.f32 %v1579_v15 }
 0x318   : > { %vm2448_vm4 = vcmp.lt.s32.totalorder %v2447_v33, 0  ;;  %v1966_v37 = vsel %vm1964_vm2, %v1965_v18, %v4026_v46  ;;  %v2026_v38 = vsub.s32 32, %v2025_v49  ;;  %v1678_v7 = vmul.f32 %v1677_v10, %v1675_v48 }
 0x319   : > { %v4055_v9 = vmul.f32 %v1781_v45, %v1779_v56  ;;  %v1967_v32 = vadd.s32 %v1966_v37, %v1962_v12  ;;  %v2019_v54 = vor.u32 8388608, %v2018_v43  ;;  %v4057_v6 = vsel %vm2448_vm4, 0, %v2447_v33 }
 0x31a   : > { %v4059_v5 = vshrl.u32 %v2023_v29, 5  ;;  %v2034_v47 = vshll.u32 %v4484_v41, %v2025_v49  ;;  %v4064_v3 = vadd.f32 %v3723_v27, %v3912_v39  ;;  %v2029_v28 = vshrl.u32 %v4483_v14, %v2026_v38 }
 0x31b   : > { %v1968_v50 = vadd.s32 536870912, %v1967_v32  ;;  %v2032_v22 = vshrl.u32 %v4484_v41, %v2026_v38  ;;  %v2035_v46 = vshrl.u32 %v4478_v13, %v2026_v38  ;;  %v2028_v15 = vshll.u32 %v4486_v52, %v2025_v49 }
 0x31c   : > { %v2031_v1 = vshll.u32 %v4483_v14, %v2025_v49  ;;  %v2037_v8 = vshll.u32 %v4478_v13, %v2025_v49  ;;  %v2038_v59 = vshrl.u32 %v4530_v60, %v2026_v38  ;;  %v1679_v30 = vxor.u32 2147483648, %v1678_v7 }
 0x31d   : > { %v1783_v11 = vxor.u32 2147483648, %v4055_v9  ;;  %v4074_v27 = vshrl.u32 %v1968_v50, 30  ;;  %v2036_v39 = vor.u32 %v2035_v46, %v2034_v47  ;;  %v1879_v21 = vsub.s32 4294967266, %v4057_v6 }
 0x31e   : > { %v2030_v61 = vor.u32 %v2029_v28, %v2028_v15  ;;  %v2033_v48 = vor.u32 %v2032_v22, %v2031_v1  ;;  %v2039_v34 = vor.u32 %v2038_v59, %v2037_v8  ;;  %v4539_v16 = vand.u32 2147483647, %v3708_v51 }
 0x31f   : > { %v1970_v18 = vshll.u32 %v4074_v27, 30  ;;  %v2040_v58 = vshll.u32 %v4530_v60, %v2025_v49  ;;  %v2041_v43 = vshrl.u32 %v4531_v23, %v2026_v38  ;;  %v2059_v29 = vshll.u32 %v2019_v54, 8  ;;  %v4086_v53 = vpop.eup %2629 }
 0x320   : > { %vm4079_vm5 = vcmp.le.f32.partialorder %v4539_v16, 0.7853982  ;;  %vm1701_vm15 = vcmp.lt.s32.totalorder %v3721_v26, 0  ;;  %v1875_v33 = vsub.s32 32, %v4057_v6  ;;  %v2027_v10 = vshrl.u32 %v4486_v52, %v2026_v38 }
 0x321   : > { %vm2046_vm12 = vcmp.lt.s32.totalorder %v4059_v5, 4  ;;  %v2118_v45 = vand.u32 2139095040, %v4064_v3  ;;  %v4093_v12 = vsub.s32 %v1967_v32, %v1970_v18  ;;  %v2042_v37 = vor.u32 %v2041_v43, %v2040_v58  ;;  %v4098_v54 = vpop.eup %2631 }
 0x322   : > { %vm2043_vm0 = vcmp.lt.s32.totalorder %v4059_v5, 1  ;;  %v2048_v49 = vsel %vm2046_vm12, %v2036_v39, 2102212464  ;;  %v1880_v47 = vadd.s32 127, %v1879_v21  ;;  %vm2045_vm6 = vcmp.lt.s32.totalorder %v4059_v5, 3 }
 0x323   : > { %v2051_v50 = vsel %vm2043_vm0, %v2030_v61, %v2033_v48  ;;  %v2052_v38 = vsel %vm2046_vm12, %v2039_v34, 920167782  ;;  %v4542_v28 = vand.u32 2147483647, %v3721_v26  ;;  %v1973_v22 = vsub.s32 0, %v4093_v12 }
 0x324   : > { %vm2044_vm8 = vcmp.lt.s32.totalorder %v4059_v5, 2  ;;  %v2053_v46 = vsel %vm2045_vm6, %v2036_v39, %v2052_v38  ;;  %v2055_v15 = vsel %vm2043_vm0, %v2033_v48, %v2036_v39  ;;  %v2047_v1 = vsel %vm2043_vm0, %v2027_v10, %v2030_v61 }
 0x325   : > { %vm4105_vm3 = vcmp.le.f32.partialorder %v4542_v28, 0.7853982  ;;  %v2049_v8 = vsel %vm2045_vm6, %v2033_v48, %v2048_v49  ;;  %v2054_v59 = vsel %vm2044_vm8, %v2051_v50, %v2053_v46  ;;  %v2056_v21 = vsel %vm2046_vm12, %v2042_v37, 1326507024 }
 0x326   : > { %v2450_v16 = vmin.u32 %v1973_v22, %v4093_v12  ;;  %v2057_v18 = vsel %vm2045_vm6, %v2039_v34, %v2056_v21  ;;  %v4116_v58 = vmul.u32.u64.low %v2059_v29, %v2054_v59  ;;  %v4117_v43 = vmul.u32.u64.high %v2059_v29, %v2054_v59, %v4116_v58 }
 0x327   : > { %v4545_v28 = vsel %vm3916_vm11, 0, %v3906_v25  ;;  %v1680_v39 = vsel %vm1597_vm7, %v1679_v30, %v1678_v7  ;;  %v2058_v61 = vsel %vm2044_vm8, %v2055_v15, %v2057_v18  ;;  %v2119_v48 = vshrl.u32 %v2118_v45, 23 }
 0x328   : > { %v4123_v38 = vadd.s32 3, %v4545_v28  ;;  %v1859_v10 = vadd.s32 %v3963_v0, %v3968_v40  ;;  %v1975_v34 = vclz %v2450_v16  ;;  %2633 = vcosq.f32 %v3936_v2 }
 0x329   : > { %v4131_v37 = vmul.u32.u64.low %v2059_v29, %v2058_v61  ;;  %v4132_v49 = vmul.u32.u64.high %v2059_v29, %v2058_v61, %v4131_v37  ;;  %v1684_v25 = vsel %vm4079_vm5, 0, %v4050_v55  ;;  %v2050_v31 = vsel %vm2044_vm8, %v2047_v1, %v2049_v8 }
 0x32a   : > { %v2457_v7 = vadd.s32 4294967169, %v2119_v48  ;;  %v1784_v30 = vsel %vm1701_vm15, %v1783_v11, %v4055_v9  ;;  %v1877_v45 = vshrl.u32 %v1859_v10, %v1875_v33  ;;  %v1881_v0 = vshll.u32 %v1880_v47, 23 }
 0x32b   : > { %v2069_v40 = vadd.s32 1, %v4117_v43  ;;  %v1683_v50 = vsel %vm4079_vm5, %v3708_v51, %v1680_v39  ;;  %v2115_v22 = vand.u32 2147483647, %v4064_v3  ;;  %v1577_v55 = vsub.s32 4, %v3820_v44 }
 0x32c   : > { %v2125_v46 = vadd.s32 1, %v2457_v7  ;;  %v1876_v5 = vshll.u32 %v4018_v57, %v4057_v6  ;;  %v2451_v15 = vadd.s32 4294967294, %v1975_v34  ;;  %v2066_v1 = vmul.u32 %v2059_v29, %v2050_v31 }
 0x32d   : > { %vm2068_vm11 = vc.u32 %v4132_v49, %v4116_v58  ;;  %2635 = vsinq.f32 %v3936_v2  ;;  %v1787_v9 = vsel %vm4105_vm3, %v3721_v26, %v1784_v30  ;;  %v4159_v33 = vor.u32 4788187, %v1881_v0 }
 0x32e   : > { %v2070_v11 = vsel %vm2068_vm11, %v2069_v40, %v4117_v43  ;;  %vm2126_vm7 = vcmp.gt.s32.totalorder %v2125_v46, 0  ;;  %2637 = vcosq.f32 %v1683_v50  ;;  %v4157_v56 = vor.u32 %v1877_v45, %v1876_v5 }
 0x32f   : > { %v2071_v47 = vadd.s32 %v2070_v11, %v2066_v1  ;;  %2639 = vsinq.f32 %v1683_v50  ;;  %v4161_v57 = vadd.s32 3, %v1684_v25  ;;  %v2122_v6 = vand.u32 8388607, %v2115_v22 }
 0x330   : > { %v2127_v2 = vsel %vm2126_vm7, %v2125_v46, 0  ;;  %2641 = vcosq.f32 %v1787_v9  ;;  %vm2452_vm9 = vcmp.lt.s32.totalorder %v2451_v15, 0  ;;  %v1578_v8 = vsel %vm1493_vm10, %v1577_v55, %v3820_v44 }
 0x331   : > { %v2072_v29 = vadd.s32 536870912, %v2071_v47  ;;  %2643 = vsinq.f32 %v1787_v9  ;;  %v4170_v59 = vadd.s32 %v4025_v35, %v4039_v17  ;;  %v2129_v21 = vand.u32 31, %v2127_v2 }
 0x332   : > { %v1588_v16 = vxor.u32 2147483648, %v4098_v54  ;;  %v1883_v18 = vand.u32 2147483647, %v4159_v33  ;;  %v1885_v43 = vcvt.s32.f32 %v4157_v56  ;;  %v1591_v39 = vxor.u32 2147483648, %v4086_v53  ;;  %v4178_v61 = vpop.eup %2633 }
 0x333   : > { %v4175_v28 = vshrl.u32 %v2072_v29, 30  ;;  %v4180_v48 = vsel %vm2452_vm9, 0, %v2451_v15  ;;  %v2123_v44 = vor.u32 8388608, %v2122_v6  ;;  %v2130_v10 = vsub.s32 32, %v2129_v21 }
 0x334   : > { %v1580_v35 = vsel %vm4004_vm1, 0, %v1578_v8  ;;  %v4185_v17 = vadd.s32 %v4116_v58, %v4132_v49  ;;  %v2132_v37 = vshll.u32 %v4486_v52, %v2129_v21  ;;  %v1785_v25 = vsub.s32 4, %v3931_v36 }
 0x335   : > { %v2074_v34 = vshll.u32 %v4175_v28, 30  ;;  %v2133_v31 = vshrl.u32 %v4483_v14, %v2130_v10  ;;  %v2135_v7 = vshll.u32 %v4483_v14, %v2129_v21  ;;  %v2136_v30 = vshrl.u32 %v4484_v41, %v2130_v10 }
 0x336   : > { %v2139_v45 = vshrl.u32 %v4478_v13, %v2130_v10  ;;  %v1983_v20 = vsub.s32 4294967266, %v4180_v48  ;;  %v2128_v58 = vshrl.u32 %v2127_v2, 5  ;;  %v2138_v49 = vshll.u32 %v4484_v41, %v2129_v21 }
 0x337   : > { %v4195_v0 = vsub.s32 %v2071_v47, %v2074_v34  ;;  %v4198_v40 = vpop.eup %2635  ;;  %v1979_v50 = vsub.s32 32, %v4180_v48  ;;  %v2134_v46 = vor.u32 %v2133_v31, %v2132_v37  ;;  %v2137_v55 = vor.u32 %v2136_v30, %v2135_v7 }
 0x338   : > { %v4201_v5 = vshll.u32 %v2123_v44, 8  ;;  %v4203_v14 = vpop.eup %2637  ;;  %v2140_v1 = vor.u32 %v2139_v45, %v2138_v49  ;;  %v2141_v9 = vshll.u32 %v4478_v13, %v2129_v21  ;;  %v2142_v11 = vshrl.u32 %v4530_v60, %v2130_v10 }
 0x339   : > { %v2077_v15 = vsub.s32 0, %v4195_v0  ;;  %v4208_v47 = vpop.eup %2639  ;;  %v2144_v41 = vshll.u32 %v4530_v60, %v2129_v21  ;;  %v2145_v6 = vshrl.u32 %v4531_v23, %v2130_v10  ;;  %v1584_v2 = vadd.s32 3, %v1580_v35 }
 0x33a   : > { %v1786_v29 = vsel %vm1701_vm15, %v1785_v25, %v3931_v36  ;;  %v4215_v8 = vpop.eup %2641  ;;  %v1984_v44 = vadd.s32 127, %v1983_v20  ;;  %v2143_v37 = vor.u32 %v2142_v11, %v2141_v9  ;;  %vm2147_vm10 = vcmp.lt.s32.totalorder %v2128_v58, 1 }
 0x33b   : > { %v2454_v34 = vmin.u32 %v2077_v15, %v4195_v0  ;;  %v2644_v13 = vpop.eup %2643  ;;  %v2131_v31 = vshrl.u32 %v4486_v52, %v2130_v10  ;;  %v2146_v7 = vor.u32 %v2145_v6, %v2144_v41  ;;  %vm2150_vm1 = vcmp.lt.s32.totalorder %v2128_v58, 4 }
 0x33c   : > { %v2155_v60 = vsel %vm2147_vm10, %v2134_v46, %v2137_v55  ;;  %vm2149_vm14 = vcmp.lt.s32.totalorder %v2128_v58, 3  ;;  %v2152_v23 = vsel %vm2150_vm1, %v2140_v1, 2102212464  ;;  %v2156_v35 = vsel %vm2150_vm1, %v2143_v37, 920167782 }
 0x33d   : > { %v2079_v21 = vclz %v2454_v34  ;;  %vm2148_vm2 = vcmp.lt.s32.totalorder %v2128_v58, 2  ;;  %v2157_v30 = vsel %vm2149_vm14, %v2140_v1, %v2156_v35  ;;  %v2159_v36 = vsel %vm2147_vm10, %v2137_v55, %v2140_v1 }
 0x33e   : > { %v1585_v25 = vand.u32 3, %v1584_v2  ;;  %v2151_v20 = vsel %vm2147_vm10, %v2131_v31, %v2134_v46  ;;  %v2158_v49 = vsel %vm2148_vm2, %v2155_v60, %v2157_v30  ;;  %v2160_v15 = vsel %vm2150_vm1, %v2146_v7, 1326507024 }
 0x33f   : > { %v2455_v45 = vadd.s32 4294967294, %v2079_v21  ;;  %v2153_v9 = vsel %vm2149_vm14, %v2137_v55, %v2152_v23  ;;  %v2161_v11 = vsel %vm2149_vm14, %v2143_v37, %v2160_v15  ;;  %v1980_v41 = vshll.u32 %v4093_v12, %v4180_v48 }
 0x340   : > { %v4221_v52 = vmul.u32.u64.low %v4201_v5, %v2158_v49  ;;  %v4222_v10 = vmul.u32.u64.high %v4201_v5, %v2158_v49, %v4221_v52  ;;  %v2162_v6 = vsel %vm2148_vm2, %v2159_v36, %v2161_v11  ;;  %v1788_v1 = vsel %vm4105_vm3, 0, %v1786_v29 }
 0x341   : > { %vm2456_vm4 = vcmp.lt.s32.totalorder %v2455_v45, 0  ;;  %v1981_v46 = vshrl.u32 %v4170_v59, %v1979_v50  ;;  %v4232_v55 = vmul.u32.u64.low %v4201_v5, %v2162_v6  ;;  %v4233_v34 = vmul.u32.u64.high %v4201_v5, %v2162_v6, %v4232_v55 }
 0x342   : > { %v2082_v2 = vsel %vm2456_vm4, 0, %v2455_v45  ;;  %vm1583_vm5 = vweird.f32 %v3702_v62  ;;  %vm1791_vm15 = vweird.f32 %v3721_v26  ;;  %v1985_v37 = vshll.u32 %v1984_v44, 23 }
 0x343   : > { %v2087_v31 = vsub.s32 4294967266, %v2082_v2  ;;  %v2154_v12 = vsel %vm2148_vm2, %v2151_v20, %v2153_v9  ;;  %v1796_v48 = vxor.u32 2147483648, %v2644_v13  ;;  %v2173_v7 = vadd.s32 1, %v4222_v10 }
 0x344   : > { %vm1587_vm12 = vcmp.eq.s32.totalorder %v1585_v25, 0  ;;  %vm1590_vm0 = vcmp.eq.s32.totalorder %v1585_v25, 2  ;;  %v1792_v32 = vadd.s32 3, %v1788_v1  ;;  %v1799_v44 = vxor.u32 2147483648, %v4215_v8 }
 0x345   : > { %v2088_v59 = vadd.s32 127, %v2087_v31  ;;  %v1589_v50 = vsel %vm1587_vm12, %v4086_v53, %v1588_v16  ;;  %v1592_v29 = vsel %vm1590_vm0, %v1591_v39, %v4098_v54  ;;  %v1982_v60 = vor.u32 %v1981_v46, %v1980_v41 }
 0x346   : > { %v2170_v58 = vmul.u32 %v4201_v5, %v2154_v12  ;;  %vm2172_vm6 = vc.u32 %v4233_v34, %v4221_v52  ;;  %v1793_v21 = vand.u32 3, %v1792_v32  ;;  %v1986_v23 = vor.u32 4788187, %v1985_v37 }
 0x347   : > { %v2083_v35 = vsub.s32 32, %v2082_v2  ;;  %v2174_v30 = vsel %vm2172_vm6, %v2173_v7, %v4222_v10  ;;  %vm1586_vm3 = vcmp.lt.s32.totalorder %v1585_v25, 2  ;;  %v2089_v53 = vshll.u32 %v2088_v59, 23 }
 0x348   : > { %v2175_v36 = vadd.s32 %v2174_v30, %v2170_v58  ;;  %v1593_v16 = vsel %vm1586_vm3, %v1589_v50, %v1592_v29  ;;  %vm1795_vm8 = vcmp.eq.s32.totalorder %v1793_v21, 0  ;;  %vm1798_vm11 = vcmp.eq.s32.totalorder %v1793_v21, 2 }
 0x349   : > { %vm1794_vm7 = vcmp.lt.s32.totalorder %v1793_v21, 2  ;;  %v1797_v54 = vsel %vm1795_vm8, %v4215_v8, %v1796_v48  ;;  %v1800_v39 = vsel %vm1798_vm11, %v1799_v44, %v2644_v13  ;;  %v1481_v20 = vand.u32 3, %v4123_v38 }
 0x34a   : > { %v2176_v45 = vadd.s32 536870912, %v2175_v36  ;;  %v1801_v5 = vsel %vm1794_vm7, %v1797_v54, %v1800_v39  ;;  %v1484_v49 = vxor.u32 2147483648, %v4198_v40  ;;  %v2085_v15 = vshrl.u32 %v4185_v17, %v2083_v35 }
 0x34b   : > { %v1594_v25 = vsel %vm1583_vm5, nan, %v1593_v16  ;;  %v1802_v9 = vsel %vm1791_vm15, nan, %v1801_v5  ;;  %v1487_v11 = vxor.u32 2147483648, %v4178_v61  ;;  %v2084_v10 = vshll.u32 %v4195_v0, %v2082_v2 }
 0x34c   : > { %v4260_v8 = vshrl.u32 %v2176_v45, 30  ;;  %v2476_v13 = vpack.c.bf16 %v1802_v9, %v1594_v25  ;;  %vm1483_vm9 = vcmp.eq.s32.totalorder %v1481_v20, 0  ;;  %v2090_v41 = vor.u32 4788187, %v2089_v53 }
 0x34d   : > { %v1485_v38 = vsel %vm1483_vm9, %v4178_v61, %v1484_v49  ;;  %vm1486_vm10 = vcmp.eq.s32.totalorder %v1481_v20, 2  ;;  %v1689_v17 = vand.u32 3, %v4161_v57  ;;  %v1692_v6 = vxor.u32 2147483648, %v4208_v47 }
 0x34e   : > { %v2178_v62 = vshll.u32 %v4260_v8, 30  ;;  %2477 = vmatprep.subr.bf16.mxu0 %v2476_v13  ;;  %v1488_v26 = vsel %vm1486_vm10, %v1487_v11, %v4198_v40  ;;  %v1695_v1 = vxor.u32 2147483648, %v4203_v14  ;;  %v1987_v0 = vand.u32 2147483647, %v1986_v23 }
 0x34f   : > { %v2086_v46 = vor.u32 %v2085_v15, %v2084_v10  ;;  %vm1482_vm1 = vcmp.lt.s32.totalorder %v1481_v20, 2  ;;  %vm1691_vm14 = vcmp.eq.s32.totalorder %v1689_v17, 0  ;;  %vm1694_vm2 = vcmp.eq.s32.totalorder %v1689_v17, 2 }
 0x350   : > { %v2179_v2 = vsub.s32 %v2175_v36, %v2178_v62  ;;  %v1489_v55 = vsel %vm1482_vm1, %v1485_v38, %v1488_v26  ;;  %v1693_v61 = vsel %vm1691_vm14, %v4203_v14, %v1692_v6  ;;  %v1989_v37 = vcvt.s32.f32 %v1982_v60 }
 0x351   : > { %v2091_v57 = vand.u32 2147483647, %v2090_v41  ;;  %vm1690_vm4 = vcmp.lt.s32.totalorder %v1689_v17, 2  ;;  %v1696_v31 = vsel %vm1694_vm2, %v1695_v1, %v4208_v47  ;;  %vm1479_vm5 = vweird.f32 %v3700_v63 }
 0x352   : > { %v2181_v12 = vsub.s32 0, %v2179_v2  ;;  %vm1687_vm15 = vweird.f32 %v3708_v51  ;;  %v1697_v40 = vsel %vm1690_vm4, %v1693_v61, %v1696_v31  ;;  %v1886_v48 = vmul.f32 %v1885_v43, %v1883_v18 }
 0x353   : > { %v2093_v7 = vcvt.s32.f32 %v2086_v46  ;;  %v1490_v32 = vsel %vm1479_vm5, nan, %v1489_v55  ;;  %v1698_v14 = vsel %vm1687_vm15, nan, %v1697_v40  ;;  %v1990_v59 = vmul.f32 %v1989_v37, %v1987_v0 }
 0x354   : > { %v2458_v50 = vmin.u32 %v2181_v12, %v2179_v2  ;;  %v2478_v29 = vpack.c.bf16 %v1698_v14, %v1490_v32  ;;  %v1887_v47 = vxor.u32 2147483648, %v1886_v48  ;;  %vm1805_vm12 = vcmp.lt.s32.totalorder %v3857_v4, 0 }
 0x355   : > { %v2094_v44 = vmul.f32 %v2093_v7, %v2091_v57  ;;  %v1991_v58 = vxor.u32 2147483648, %v1990_v59  ;;  %vm1909_vm6 = vcmp.lt.s32.totalorder %v3872_v24, 0  ;;  %vm2013_vm3 = vcmp.lt.s32.totalorder %v3922_v19, 0 }
 0x356   : > { %v2183_v60 = vclz %v2458_v50  ;;  %2479 = vmatpush1.bf16.msra.mxu0 %v2478_v29  ;;  %v1888_v51 = vsel %vm1805_vm12, %v1887_v47, %v1886_v48  ;;  %v2171_v18 = vadd.s32 %v4221_v52, %v4233_v34  ;;  %v4546_v35 = vand.u32 2147483647, %v3857_v4 }
 0x357   : > { %v2095_v21 = vxor.u32 2147483648, %v2094_v44  ;;  %v1992_v33 = vsel %vm1909_vm6, %v1991_v58, %v1990_v59  ;;  %v4549_v36 = vand.u32 2147483647, %v3872_v24  ;;  %v4552_v5 = vand.u32 2147483647, %v3922_v19 }
 0x358   : > { %v2459_v63 = vadd.s32 4294967294, %v2183_v60  ;;  %vm4287_vm8 = vcmp.le.f32.partialorder %v4546_v35, 0.7853982  ;;  %v2097_v9 = vsub.s32 4, %v4175_v28  ;;  %v1993_v10 = vsub.s32 4, %v4074_v27 }
 0x359   : > { %vm4293_vm11 = vcmp.le.f32.partialorder %v4549_v36, 0.7853982  ;;  %v2096_v53 = vsel %vm2013_vm3, %v2095_v21, %v2094_v44  ;;  %v1891_v52 = vsel %vm4287_vm8, %v3857_v4, %v1888_v51  ;;  %vm4307_vm7 = vcmp.le.f32.partialorder %v4552_v5, 0.7853982 }
 0x35a   : > { %vm2460_vm0 = vcmp.lt.s32.totalorder %v2459_v63, 0  ;;  %v1995_v45 = vsel %vm4293_vm11, %v3872_v24, %v1992_v33  ;;  %v2099_v49 = vsel %vm4307_vm7, %v3922_v19, %v2096_v53  ;;  %2645 = vcosq.f32 %v1891_v52 }
 0x35b   : > { %v2186_v56 = vsel %vm2460_vm0, 0, %v2459_v63  ;;  %2647 = vcosq.f32 %v1995_v45  ;;  %v1889_v13 = vsub.s32 4, %v4011_v42  ;;  %v2098_v17 = vsel %vm2013_vm3, %v2097_v9, %v4175_v28 }
 0x35c   : > { %v2187_v43 = vsub.s32 32, %v2186_v56  ;;  %v2191_v23 = vsub.s32 4294967266, %v2186_v56  ;;  %v2188_v34 = vshll.u32 %v2179_v2, %v2186_v56  ;;  %2649 = vcosq.f32 %v2099_v49 }
 0x35d   : > { %2651 = vsinq.f32 %v2099_v49  ;;  %v2201_v26 = vsub.s32 4, %v4260_v8  ;;  %v1994_v6 = vsel %vm1909_vm6, %v1993_v10, %v4074_v27  ;;  %v1890_v1 = vsel %vm1805_vm12, %v1889_v13, %v4011_v42 }
 0x35e   : > { %v2189_v54 = vshrl.u32 %v2171_v18, %v2187_v43  ;;  %v2192_v39 = vadd.s32 127, %v2191_v23  ;;  %2653 = vsinq.f32 %v1995_v45  ;;  %v2100_v46 = vsel %vm4307_vm7, 0, %v2098_v17 }
 0x35f   : > { %2655 = vsinq.f32 %v1891_v52  ;;  %vm2117_vm9 = vcmp.lt.s32.totalorder %v4064_v3, 0  ;;  %vm4332_vm10 = vcmp.le.f32.partialorder %v2115_v22, 0.7853982  ;;  %v1996_v27 = vsel %vm4293_vm11, 0, %v1994_v6 }
 0x360   : > { %v2190_v15 = vor.u32 %v2189_v54, %v2188_v34  ;;  %v2193_v25 = vshll.u32 %v2192_v39, 23  ;;  %v2202_v55 = vsel %vm2117_vm9, %v2201_v26, %v4260_v8  ;;  %v1892_v42 = vsel %vm4287_vm8, 0, %v1890_v1 }
 0x361   : > { %v2104_v31 = vadd.s32 3, %v2100_v46  ;;  %v2000_v12 = vadd.s32 3, %v1996_v27  ;;  %v2204_v40 = vsel %vm4332_vm10, 0, %v2202_v55  ;;  %v1896_v7 = vadd.s32 3, %v1892_v42 }
 0x362   : > { %v2194_v11 = vor.u32 4788187, %v2193_v25  ;;  %v2197_v38 = vcvt.s32.f32 %v2190_v15  ;;  %v2208_v14 = vadd.s32 3, %v2204_v40  ;;  %vm2103_vm7 = vweird.f32 %v3922_v19  ;;  %v2219_v19 = vld [vmem:[%s4406_s5] sm:$0xf] }
 0x363   : > { %v2105_v59 = vand.u32 3, %v2104_v31  ;;  %v2001_v50 = vand.u32 3, %v2000_v12  ;;  %v1897_v58 = vand.u32 3, %v1896_v7 }
 0x364   : > { %v2195_v41 = vand.u32 2147483647, %v2194_v11  ;;  %v2646_v61 = vpop.eup %2645  ;;  %v2209_v51 = vand.u32 3, %v2208_v14 }
 0x365   : > { %v2648_v57 = vpop.eup %2647  ;;  %v1903_v21 = vxor.u32 2147483648, %v2646_v61  ;;  %vm2107_vm1 = vcmp.eq.s32.totalorder %v2105_v59, 0  ;;  %vm2110_vm14 = vcmp.eq.s32.totalorder %v2105_v59, 2  ;;  %vm2003_vm2 = vcmp.eq.s32.totalorder %v2001_v50, 0 }
 0x366   : > { %v2198_v62 = vmul.f32 %v2197_v38, %v2195_v41  ;;  %v2650_v22 = vpop.eup %2649  ;;  %v2007_v47 = vxor.u32 2147483648, %v2648_v57  ;;  %vm2006_vm4 = vcmp.eq.s32.totalorder %v2001_v50, 2  ;;  %vm1899_vm5 = vcmp.eq.s32.totalorder %v1897_v58, 0 }
 0x367   : > { %v2652_v48 = vpop.eup %2651  ;;  %v2111_v44 = vxor.u32 2147483648, %v2650_v22  ;;  %vm1902_vm15 = vcmp.eq.s32.totalorder %v1897_v58, 2  ;;  %vm2106_vm12 = vcmp.lt.s32.totalorder %v2105_v59, 2  ;;  %vm2002_vm0 = vcmp.lt.s32.totalorder %v2001_v50, 2 }
 0x368   : > { %v2199_v0 = vxor.u32 2147483648, %v2198_v62  ;;  %v2654_v8 = vpop.eup %2653  ;;  %v2108_v29 = vxor.u32 2147483648, %v2652_v48  ;;  %vm2214_vm6 = vcmp.eq.s32.totalorder %v2209_v51, 2  ;;  %vm2211_vm3 = vcmp.eq.s32.totalorder %v2209_v51, 0 }
 0x369   : > { %v2656_v32 = vpop.eup %2655  ;;  %v2004_v60 = vxor.u32 2147483648, %v2654_v8  ;;  %v2112_v33 = vsel %vm2110_vm14, %v2111_v44, %v2652_v48  ;;  %v2008_v23 = vsel %vm2006_vm4, %v2007_v47, %v2654_v8  ;;  %vm1898_vm8 = vcmp.lt.s32.totalorder %v1897_v58, 2 }
 0x36a   : > { %v2200_v2 = vsel %vm2117_vm9, %v2199_v0, %v2198_v62  ;;  %v1900_v63 = vxor.u32 2147483648, %v2656_v32  ;;  %v2109_v56 = vsel %vm2107_vm1, %v2650_v22, %v2108_v29  ;;  %v1904_v16 = vsel %vm1902_vm15, %v1903_v21, %v2656_v32 }
 0x36b   : > { %v2203_v37 = vsel %vm4332_vm10, %v4064_v3, %v2200_v2  ;;  %v2005_v43 = vsel %vm2003_vm2, %v2648_v57, %v2004_v60  ;;  %v2113_v52 = vsel %vm2106_vm12, %v2109_v56, %v2112_v33  ;;  %vm2210_vm11 = vcmp.lt.s32.totalorder %v2209_v51, 2 }
 0x36c   : > { %2657 = vcosq.f32 %v2203_v37  ;;  %v1901_v36 = vsel %vm1899_vm5, %v2646_v61, %v1900_v63  ;;  %v2009_v34 = vsel %vm2002_vm0, %v2005_v43, %v2008_v23  ;;  %vm1999_vm9 = vweird.f32 %v3872_v24  ;;  %v2224_v24 = vpop.permute.xlu0 %2223 }
 0x36d   : > { %2659 = vsinq.f32 %v2203_v37  ;;  %v1905_v45 = vsel %vm1898_vm8, %v1901_v36, %v1904_v16  ;;  %vm2207_vm10 = vweird.f32 %v4064_v3  ;;  %v2114_v20 = vsel %vm2103_vm7, nan, %v2113_v52 }
 0x36e   : > { %v2010_v49 = vsel %vm1999_vm9, nan, %v2009_v34  ;;  %vm1895_vm1 = vweird.f32 %v3857_v4 }
 0x36f   : > { %v1906_v9 = vsel %vm1895_vm1, nan, %v1905_v45 }
 0x370   : > { %v2482_v11 = vpack.c.bf16 %v2114_v20, %v1906_v9 }
 0x376   : > { %v2658_v18 = vpop.eup %2657 }
 0x377   : > { %v2660_v35 = vpop.eup %2659  ;;  %v2215_v30 = vxor.u32 2147483648, %v2658_v18 }
 0x378   : > { %v2212_v53 = vxor.u32 2147483648, %v2660_v35 }
 0x379   : > { %v2216_v54 = vsel %vm2214_vm6, %v2215_v30, %v2660_v35 }
 0x37a   : > { %v2213_v39 = vsel %vm2211_vm3, %v2658_v18, %v2212_v53 }
 0x37b   : > { %v2217_v5 = vsel %vm2210_vm11, %v2213_v39, %v2216_v54 }
 0x37c   : > { %v2218_v15 = vsel %vm2207_vm10, nan, %v2217_v5 }
 0x37d   : > { %v2480_v25 = vpack.c.bf16 %v2218_v15, %v2010_v49 }
 0x37f   : > { %2481 = vmatprep.subr.bf16.mxu0 %v2480_v25 }
 0x380   : > { %2483 = vmatpush1.bf16.msra.mxu0 %v2482_v11 }
 0x383   : > { %2461 = vmatmul.mubr.msk.f32.vlgmr.msra.gmra.mrb[8].mxu0 %vm1285_vm13, %v2219_v19 }
 0x456   : > { %v2295_v3 = vpop.f32.mrb[8].mxu0 }
 0x457   : > { %v2296_v10 = vadd.f32 %v2295_v3, %v2224_v24  ;;  %v2297_v13 = vpop.f32.mrb[9].mxu0 }
 0x458   : > { %v2298_v4 = vadd.f32 %v2297_v13, %v2224_v24 }
 0x45a   : > { %v2302_v41 = vcombine.low %v2296_v10, %v2298_v4 }
 0x45c   : > { %2304 = vst [vmem:[%s272_s16] sm:$0xff] %v2302_v41 }
 0x45d   : > { %2674 = shalt.err (!%p2671_p3)
}
 0x45e   : > { %s2675_s29 = scalar_lea.hbm %s4359_s19, 128  ;;  %s2679_s14 = scalar_lea.hbm %s4408_s7, 256 }
 0x45f   : > { %p2676_p4 = scmp.ne.s32.totalorder %s4359_s19, %s2675_s29  ;;  %p2680_p9 = scmp.lt.u32.totalorder %s4359_s19, %s4408_s7 }
 0x460   : > { %p2681_p10 = scmp.lt.u32.totalorder %s2679_s14, %s2675_s29  ;;  %p2683_p12 = scmp.lt.u32.totalorder %s2675_s29, %s4359_s19 }
 0x461   : > { %p2677_p7 = pnand %p2676_p4, %p2812_p5 }
 0x462   : > { %p2682_p11 = por %p2681_p10, %p2680_p9 }
 0x463   : > { %p2678_p8 = pneg %p2677_p7 }
 0x464   : > { %p2684_p13 = por %p2683_p12, %p2682_p11 }
 0x466   : > { %p2685_p0 = pnand %p2684_p13, %p2678_p8 }
 0x468   : > { %2688 = shalt.err (!%p2685_p0)
}
 0x469   : > { %2548 = dma.vmem_to_hbm [thread:$0]  (%p2812_p5), %s4361_s17, 128, %s4359_s19, %s2306_s20  }
 0x46a PF: > { %p2554_p1 = scmp.ge.s32.totalorder %s2723_s27, 2  ;;  %s2332_s13 = sand.u32 1, %s2711_s24  }
 0x46b   : > { %s2333_s18 = scalar_lea.sflag [#allocation3], %s2332_s13 }
 0x46c   : > { %p2551_p2 = pnand %p2554_p1, %p2816_p6 }
 0x46e   : > { %2706 = dma.done.wait (!%p2551_p2), %s2333_s18, 128  }
 0x46f   : > { %2708 = vsyncadd (!%p2551_p2), %s2333_s18, 4294967168  ;;  %p17_p3 = scmp.ge.s32.totalorder %s2799_s30, 4   ;;  %s4557_s24 = smov %s2715_s25 }
 0x470   : > { %s4558_s25 = smov %s2719_s26  ;;  %s4559_s26 = smov %s2810_s10 }
 0x471   : > { %s4560_s27 = smov %s2799_s30  ;;  %19 = sbr.rel (!%p17_p3) target bundleno = 3 (0x3), region = 83 }
 0x478   :  { %2338 = vsyncpa [#allocation3], 1 }
 0x479   :  { %2340 = vsyncpa [#allocation3 + $0x1], 1 }

</bundles_post_ra>
